<compile_context>
chip_gen: v7x
topology: tpu7x:2x2x1
jax: 0.10.0
libtpu: 0.0.40
codegen_flags: <defaults>
</compile_context>

<pallas_src>
import functools

import jax
import jax.numpy as jnp
from jax.experimental import pallas as pl
from jax.experimental.pallas import tpu as pltpu

_SMEM = pl.BlockSpec(memory_space=pltpu.MemorySpace.SMEM)
_NEG = -1e30

_VMEM_LIMIT_CACHE = None


def _vmem_limit():
    """Generation-aware scoped VMEM limit (~75% of physical, capped at 100 MiB)."""
    global _VMEM_LIMIT_CACHE
    if _VMEM_LIMIT_CACHE is None:
        try:
            cap = int(pltpu.get_tpu_info().vmem_capacity_bytes)
        except Exception:
            cap = 64 * 1024 * 1024          # conservative fallback (v7x-sized)
        _VMEM_LIMIT_CACHE = int(min(cap * 3 // 4, 100 * 1024 * 1024))
    return _VMEM_LIMIT_CACHE


# ----------------------------------------------------------------------------
# Kernel 1: fused  (embeddings = x @ W + b)  +  (masked temporal sum of x)
#   One pass over the raw tokens; sum accumulated across the seq grid axis.
# ----------------------------------------------------------------------------
def _make_embed_kernel(seq_len, tb, tl):
    def kernel(x_ref, w_ref, b_ref, mask_ref, emb_ref, sum_ref):
        li = pl.program_id(1)

        x = x_ref[...]                                           # (tb, tl, H) f32

        @pl.when(li == 0)
        def _init():
            sum_ref[...] = jnp.zeros_like(sum_ref)

        # Ragged last seq tile: gate with an in-kernel validity mask (select,
        # so garbage in the padded region cannot leak NaNs into the sum).
        pos = li * tl + jax.lax.broadcasted_iota(jnp.int32, (1, tl, 1), 1)
        in_bounds = pos < seq_len
        contrib = jnp.where(in_bounds, x * mask_ref[...][:, :, None], 0.0)
        sum_ref[...] += jnp.sum(contrib, axis=1)

        # Embeddings: per batch-row (tl, H) @ (H, H) on the MXU (bf16, f32 acc).
        xb = x.astype(jnp.bfloat16)
        w = w_ref[...]
        bias = b_ref[...]                                        # (1, H) f32
        for r in range(tb):                                      # tb <= 8, static
            emb_ref[r] = jnp.dot(xb[r], w,
                                 preferred_element_type=jnp.float32) + bias

    return kernel


def embed_and_masked_sum(x, w_bf16, bias, mask):
    """Returns (x @ W + b  [B,L,H] f32,  sum_t mask[b,t]*x[b,t,:]  [B,H] f32)."""
    bsz, seq, h = x.shape
    tb = bsz if bsz <= 8 else 8        # multiple of 8 (or full)  -> valid sublane tile
    tl = seq if seq <= 128 else 128    # multiple of 128 (or full) -> valid mask lane tile
    grid = (pl.cdiv(bsz, tb), pl.cdiv(seq, tl))

    emb, msum = pl.pallas_call(
        _make_embed_kernel(seq, tb, tl),
        out_shape=(jax.ShapeDtypeStruct((bsz, seq, h), jnp.float32),
                   jax.ShapeDtypeStruct((bsz, h), jnp.float32)),
        grid=grid,
        in_specs=[pl.BlockSpec((tb, tl, h), lambda i, l: (i, l, 0)),
                  pl.BlockSpec((h, h), lambda i, l: (0, 0)),
                  pl.BlockSpec((1, h), lambda i, l: (0, 0)),
                  pl.BlockSpec((tb, tl), lambda i, l: (i, l))],
        out_specs=(pl.BlockSpec((tb, tl, h), lambda i, l: (i, l, 0)),
                   pl.BlockSpec((tb, h), lambda i, l: (i, 0))),
        compiler_params=pltpu.CompilerParams(
            dimension_semantics=("parallel", "arbitrary"),
            vmem_limit_bytes=_vmem_limit()),
    )(x.astype(jnp.float32), w_bf16,
      bias.reshape(1, -1).astype(jnp.float32), mask.astype(jnp.float32))
    return emb, msum


# ----------------------------------------------------------------------------
# Kernel 2: batched feature heads (encoder-on-summed-tokens + proj + L2 norm)
#   Leading "parallel" grid axis over the 4 heads (img, txt, img_m, txt_m).
# ----------------------------------------------------------------------------
def _feat_head_kernel(x_ref, cnt_ref, we_ref, be_ref, wp_ref, bp_ref, o_ref):
    # Linearity collapse: sum_t(x W + b) = (sum_t x) W + count * b.
    hh = jnp.dot(x_ref[...], we_ref[...], preferred_element_type=jnp.float32)
    hh = hh + cnt_ref[...] * be_ref[...]
    y = jnp.dot(hh, wp_ref[...], preferred_element_type=jnp.float32) + bp_ref[...]
    # F.normalize(dim=-1, eps=1e-12)
    inv_norm = jax.lax.rsqrt(
        jnp.maximum(jnp.sum(y * y, axis=-1, keepdims=True), 1e-24))
    o_ref[...] = y * inv_norm


def feat_heads(x_stack, cnt_stack, we_stack, be_stack, wp_stack, bp_stack):
    n, bsz, h = x_stack.shape
    hout = wp_stack.shape[-1]
    return pl.pallas_call(
        _feat_head_kernel,
        out_shape=jax.ShapeDtypeStruct((n, bsz, hout), jnp.float32),
        grid=(n,),
        in_specs=[pl.BlockSpec((None, bsz, h), lambda i: (i, 0, 0)),
                  pl.BlockSpec((None, bsz, 1), lambda i: (i, 0, 0)),
                  pl.BlockSpec((None, h, h), lambda i: (i, 0, 0)),
                  pl.BlockSpec((None, 1, h), lambda i: (i, 0, 0)),
                  pl.BlockSpec((None, h, hout), lambda i: (i, 0, 0)),
                  pl.BlockSpec((None, 1, hout), lambda i: (i, 0, 0))],
        out_specs=pl.BlockSpec((None, bsz, hout), lambda i: (i, 0, 0)),
        compiler_params=pltpu.CompilerParams(
            dimension_semantics=("parallel",),
            vmem_limit_bytes=_vmem_limit()),
    )(x_stack.astype(jnp.float32), cnt_stack.astype(jnp.float32),
      we_stack.astype(jnp.float32), be_stack.astype(jnp.float32),
      wp_stack.astype(jnp.float32), bp_stack.astype(jnp.float32))


# ----------------------------------------------------------------------------
# Kernel 3: ITC loss.  Grid = (B row blocks "parallel", queue tiles "arbitrary").
#   row_loss = lse(s) - [alpha * E_{softmax(s_m)}[s] + (1-alpha) * E_tgt[s]]
# (targets sum to 1, so -sum(log_softmax(s)*t) collapses to the above)
# ----------------------------------------------------------------------------
def _make_itc_kernel(batch, tb, ncols, tq):
    # stats lanes: 0:m 1:l 2:m_m 3:l_m 4:sum(exp(s_m-m_m)*s) 5:sum(pos*s) 6:sum(pos) 7:pad
    def kernel(imgf_ref, imgm_ref, txtf_ref, txtm_ref,
               tcols_ref, icols_ref, tq_ref, iq_ref,
               idx_ref, idxb_ref, idxq_ref, scal_ref,
               o_ref, st_i2t, st_t2i):
        j = pl.program_id(1)
        inv_temp = scal_ref[0, 1]        # 1/temp applied to the f32 sims in-kernel

        @pl.when(j == 0)
        def _init():
            lane = jax.lax.broadcasted_iota(jnp.int32, (tb, 8), 1)
            init = jnp.where((lane == 0) | (lane == 2), _NEG, 0.0)
            st_i2t[...] = init
            st_t2i[...] = init

        # rows 0..tb-1 = live features, rows tb..2tb-1 = momentum features
        img_rows = jnp.concatenate([imgf_ref[...], imgm_ref[...]], axis=0)
        txt_rows = jnp.concatenate([txtf_ref[...], txtm_ref[...]], axis=0)

        def update(st, sim, pos, valid):
            s, sm = sim[:tb], sim[tb:]
            s_v = jnp.where(valid, s, 0.0)          # guard products on invalid cols
            stats = st[...]                         # single slab load
            m_p, l_p = stats[:, 0:1], stats[:, 1:2]
            mm_p, lm_p = stats[:, 2:3], stats[:, 3:4]
            am_p, bs_p, cn_p = stats[:, 4:5], stats[:, 5:6], stats[:, 6:7]

            m_n = jnp.maximum(
                m_p, jnp.max(jnp.where(valid, s, _NEG), axis=-1, keepdims=True))
            e = jnp.where(valid, jnp.exp(s - m_n), 0.0)
            l_n = l_p * jnp.exp(m_p - m_n) + jnp.sum(e, axis=-1, keepdims=True)

            mm_n = jnp.maximum(
                mm_p, jnp.max(jnp.where(valid, sm, _NEG), axis=-1, keepdims=True))
            cm = jnp.exp(mm_p - mm_n)
            p_m = jnp.where(valid, jnp.exp(sm - mm_n), 0.0)
            lm_n = lm_p * cm + jnp.sum(p_m, axis=-1, keepdims=True)
            am_n = am_p * cm + jnp.sum(p_m * s_v, axis=-1, keepdims=True)
            bs_n = bs_p + jnp.sum(pos * s_v, axis=-1, keepdims=True)
            cn_n = cn_p + jnp.sum(pos, axis=-1, keepdims=True)

            st[...] = jnp.concatenate(              # single slab store
                [m_n, l_n, mm_n, lm_n, am_n, bs_n, cn_n, jnp.zeros_like(m_n)],
                axis=-1)

        # In-batch columns (the B momentum-feature columns of feat_all): once
        # per row block, on the first queue tile.
        @pl.when(j == 0)
        def _in_batch():
            valid_b = jnp.ones((1, batch), dtype=jnp.bool_)
            pos_b = (idx_ref[...] == idxb_ref[...]).astype(jnp.float32)
            sim_i = jnp.dot(img_rows, tcols_ref[...],
                            preferred_element_type=jnp.float32) * inv_temp
            sim_t = jnp.dot(txt_rows, icols_ref[...],
                            preferred_element_type=jnp.float32) * inv_temp
            update(st_i2t, sim_i, pos_b, valid_b)
            update(st_t2i, sim_t, pos_b, valid_b)

        # Queue tile j (ragged last tile handled by the validity mask).
        col = j * tq + jax.lax.broadcasted_iota(jnp.int32, (1, tq), 1)
        valid = col < ncols
        pos = jnp.where(valid,
                        (idx_ref[...] == idxq_ref[...]).astype(jnp.float32), 0.0)
        sim_i = jnp.dot(img_rows, tq_ref[...],
                        preferred_element_type=jnp.float32) * inv_temp
        sim_t = jnp.dot(txt_rows, iq_ref[...],
                        preferred_element_type=jnp.float32) * inv_temp
        update(st_i2t, sim_i, pos, valid)
        update(st_t2i, sim_t, pos, valid)

        @pl.when(j == pl.num_programs(1) - 1)
        def _finalize():
            alpha = scal_ref[0, 0]

            def dir_loss(st):
                stats = st[...]
                lse = stats[:, 0:1] + jnp.log(stats[:, 1:2])
                distill = stats[:, 4:5] / stats[:, 3:4]           # exact division
                hard = stats[:, 5:6] / jnp.maximum(stats[:, 6:7], 1e-30)
                return lse - (alpha * distill + (1.0 - alpha) * hard)

            o_ref[...] = 0.5 * (dir_loss(st_i2t) + dir_loss(st_t2i))

    return kernel


def _row_tile(b):
    if b <= 8:
        return b
    t = min((b // 2) // 8 * 8, 256)
    while t >= 8:
        if b % t == 0:
            return t
        t -= 8
    return 8    # cdiv grid; ragged last row block is clipped on output writeback


def itc_loss(image_feat, image_feat_m, text_feat, text_feat_m,
             text_queue, image_queue, idx, idx_queue, alpha, inv_temp):
    bsz, h = image_feat.shape
    ncols = text_queue.shape[1]
    tb = _row_tile(bsz)
    tq = ncols if ncols <= 2048 else 2048      # large, lane-dense queue tiles
    grid = (pl.cdiv(bsz, tb), pl.cdiv(ncols, tq))

    bf = lambda a: a.astype(jnp.bfloat16)
    kernel = _make_itc_kernel(bsz, tb, ncols, tq)
    row_losses = pl.pallas_call(
        kernel,
        out_shape=jax.ShapeDtypeStruct((bsz, 1), jnp.float32),
        grid=grid,
        in_specs=[
            pl.BlockSpec((tb, h), lambda i, j: (i, 0)),    # image_feat rows
            pl.BlockSpec((tb, h), lambda i, j: (i, 0)),    # image_feat_m rows
            pl.BlockSpec((tb, h), lambda i, j: (i, 0)),    # text_feat rows
            pl.BlockSpec((tb, h), lambda i, j: (i, 0)),    # text_feat_m rows
            pl.BlockSpec((h, bsz), lambda i, j: (0, 0)),   # text_feat_m.T  (in-batch cols)
            pl.BlockSpec((h, bsz), lambda i, j: (0, 0)),   # image_feat_m.T (in-batch cols)
            pl.BlockSpec((h, tq), lambda i, j: (0, j)),    # text queue tile (bf16, persistent)
            pl.BlockSpec((h, tq), lambda i, j: (0, j)),    # image queue tile
            pl.BlockSpec((tb, 1), lambda i, j: (i, 0)),    # idx (rows)
            pl.BlockSpec((1, bsz), lambda i, j: (0, 0)),   # idx (in-batch column ids)
            pl.BlockSpec((1, tq), lambda i, j: (0, j)),    # idx_queue tile
            _SMEM,                                         # [alpha, 1/temp]
        ],
        out_specs=pl.BlockSpec((tb, 1), lambda i, j: (i, 0)),
        scratch_shapes=[pltpu.VMEM((tb, 8), jnp.float32),
                        pltpu.VMEM((tb, 8), jnp.float32)],
        compiler_params=pltpu.CompilerParams(
            dimension_semantics=("parallel", "arbitrary"),
            vmem_limit_bytes=_vmem_limit()),
    )(bf(image_feat), bf(image_feat_m), bf(text_feat), bf(text_feat_m),
      bf(text_feat_m).T, bf(image_feat_m).T,
      bf(text_queue), bf(image_queue),
      idx.reshape(bsz, 1).astype(jnp.int32),
      idx.reshape(1, bsz).astype(jnp.int32),
      idx_queue.astype(jnp.int32),
      jnp.stack([jnp.asarray(alpha, jnp.float32),
                 jnp.asarray(inv_temp, jnp.float32)]).reshape(1, 2))
    # per-row loss already includes the 0.5*(i2t + t2i); mean over rows == torch mean
    return jnp.mean(row_losses)


# ----------------------------------------------------------------------------
# Parameter / buffer setup (deterministic, mimics VTC.__init__)
# ----------------------------------------------------------------------------
def init_vtc_params(key, hidden, queue_size, temp=0.07):
    ks = jax.random.split(key, 6)

    def lin(k, fan_in, fan_out):
        kw, kb = jax.random.split(k)
        bound = 1.0 / jnp.sqrt(fan_in)
        w = jax.random.uniform(kw, (fan_in, fan_out), jnp.float32, -bound, bound)
        b = jax.random.uniform(kb, (fan_out,), jnp.float32, -bound, bound)
        return w, b

    p = {}
    p["visual_encoder"] = lin(ks[0], hidden, hidden)
    p["text_encoder"] = lin(ks[1], hidden, hidden)
    p["vision_proj"] = lin(ks[2], hidden, hidden)
    p["text_proj"] = lin(ks[3], hidden, hidden)
    # copy_params(): momentum encoders start as exact copies.
    p["visual_encoder_m"] = p["visual_encoder"]
    p["text_encoder_m"] = p["text_encoder"]
    p["vision_proj_m"] = p["vision_proj"]
    p["text_proj_m"] = p["text_proj"]

    image_queue = jax.random.normal(ks[4], (hidden, queue_size), jnp.float32)
    text_queue = jax.random.normal(ks[5], (hidden, queue_size), jnp.float32)
    image_queue = image_queue / jnp.maximum(
        jnp.linalg.norm(image_queue, axis=0, keepdims=True), 1e-12)
    text_queue = text_queue / jnp.maximum(
        jnp.linalg.norm(text_queue, axis=0, keepdims=True), 1e-12)

    # Queues stored bf16 persistently: the ITC kernel streams them from HBM
    # directly, with no per-step pad / cast / concat pass over [H, Q].
    p["image_queue"] = image_queue.astype(jnp.bfloat16)
    p["text_queue"] = text_queue.astype(jnp.bfloat16)
    p["idx_queue"] = jnp.full((1, queue_size), -100, dtype=jnp.int32)
    p["temp"] = jnp.asarray(temp, jnp.float32)
    return p


def momentum_update(params, momentum):
    """param_m = param_m * m + param * (1 - m), detached (torch.no_grad block)."""
    sg = jax.lax.stop_gradient
    mp = {}
    for name in ["visual_encoder", "text_encoder", "vision_proj", "text_proj"]:
        w, b = params[name]
        wm, bm = params[name + "_m"]
        mp[name + "_m"] = (sg(wm * momentum + w * (1.0 - momentum)),
                           sg(bm * momentum + b * (1.0 - momentum)))
    return mp


# ----------------------------------------------------------------------------
# Forward (training path), functional
# ----------------------------------------------------------------------------
@functools.partial(jax.jit, static_argnames=("momentum",))
def vtc_forward(params, text, image, alpha, idx, gt_times, momentum=0.995):
    bsz, lt, hidden = text.shape
    li = image.shape[1]

    w_ve, b_ve = params["visual_encoder"]
    w_te, b_te = params["text_encoder"]
    w_vp, b_vp = params["vision_proj"]
    w_tp, b_tp = params["text_proj"]

    # Ground-truth window mask (image) and all-ones mask (text).
    lo = jnp.ceil(gt_times[:, 0]).astype(jnp.int32)
    hi = jnp.ceil(gt_times[:, 1]).astype(jnp.int32)
    t_idx = jnp.arange(li, dtype=jnp.int32)[None, :]
    win_mask = ((t_idx >= lo[:, None]) & (t_idx < hi[:, None])).astype(jnp.float32)
    txt_mask = jnp.ones((bsz, lt), jnp.float32)

    # One fused pass over the raw tokens per modality: embeddings + masked sum.
    image_embeds, image_win = embed_and_masked_sum(
        image, w_ve.astype(jnp.bfloat16), b_ve, win_mask)
    text_embeds, text_sum = embed_and_masked_sum(
        text, w_te.astype(jnp.bfloat16), b_te, txt_mask)

    win_cnt = jnp.sum(win_mask, axis=1, keepdims=True)            # frames summed
    txt_cnt = jnp.full((bsz, 1), float(lt), jnp.float32)

    # Momentum (no_grad) weights.  The collapsed feat_head path means the
    # momentum branch needs no [B, L, H] matmul at all (valid because the
    # encoder / projection are purely affine, as in the reference module).
    sg = jax.lax.stop_gradient
    mp = momentum_update(params, momentum)
    w_vem, b_vem = mp["visual_encoder_m"]
    w_tem, b_tem = mp["text_encoder_m"]
    w_vpm, b_vpm = mp["vision_proj_m"]
    w_tpm, b_tpm = mp["text_proj_m"]

    # All four feature heads in one batched, megacore-parallel pallas_call.
    feats = feat_heads(
        jnp.stack([image_win, text_sum, image_win, text_sum]),
        jnp.stack([win_cnt, txt_cnt, win_cnt, txt_cnt]),
        jnp.stack([w_ve, w_te, w_vem, w_tem]),
        jnp.stack([b_ve, b_te, b_vem, b_tem])[:, None, :],
        jnp.stack([w_vp, w_tp, w_vpm, w_tpm]),
        jnp.stack([b_vp, b_tp, b_vpm, b_tpm])[:, None, :])
    image_feat, text_feat = feats[0], feats[1]
    image_feat_m, text_feat_m = sg(feats[2]), sg(feats[3])

    loss_itc = itc_loss(image_feat, image_feat_m, text_feat, text_feat_m,
                        sg(params["text_queue"]), sg(params["image_queue"]),
                        idx.astype(jnp.int32), params["idx_queue"],
                        alpha, 1.0 / params["temp"])

    # TODO(synk): _dequeue_and_enqueue / queue_ptr and the in-place momentum
    # weight update are stateful buffer mutations; omitted from this functional
    # forward (caller should thread updated buffers explicitly).
    return image_embeds, text_embeds, loss_itc


# ----------------------------------------------------------------------------
if __name__ == "__main__":
    B, Lt, Li, H, Q = 4, 8, 16, 32, 200

    key = jax.random.PRNGKey(0)
    kp, kt, ki = jax.random.split(key, 3)

    params = init_vtc_params(kp, hidden=H, queue_size=Q, temp=0.07)

    text = jax.random.normal(kt, (B, Lt, H), jnp.float32)
    image = jax.random.normal(ki, (B, Li, H), jnp.float32)
    gt_times = jnp.array([[1.2, 5.7], [0.0, 10.3], [3.9, 4.1], [2.0, 16.0]],
                         jnp.float32)                              # [B, 2]
    idx = jnp.array([3, 7, 3, 11], jnp.int32)                      # [B]
    alpha = jnp.float32(0.4)

    image_embeds, text_embeds, loss_itc = vtc_forward(
        params, text, image, alpha, idx, gt_times)
    jax.block_until_ready((image_embeds, text_embeds, loss_itc))

    assert image_embeds.shape == (B, Li, H)
    assert text_embeds.shape == (B, Lt, H)
    assert loss_itc.shape == ()
    assert bool(jnp.isfinite(loss_itc))
    assert bool(jnp.all(jnp.isfinite(image_embeds)))
    assert bool(jnp.all(jnp.isfinite(text_embeds)))
    print("KERNEL_OK")
</pallas_src>

<mosaic_0001>
module attributes {stable_mosaic.version = 11 : i64} {
  func.func @kernel(%arg0: i32, %arg1: i32, %arg2: memref<4x8x32xf32, #tpu.memory_space<vmem>>, %arg3: memref<32x32xbf16, #tpu.memory_space<vmem>>, %arg4: memref<1x32xf32, #tpu.memory_space<vmem>>, %arg5: memref<4x8xf32, #tpu.memory_space<vmem>>, %arg6: memref<4x8x32xf32, #tpu.memory_space<vmem>>, %arg7: memref<4x32xf32, #tpu.memory_space<vmem>>) attributes {dimension_semantics = [#tpu.dimension_semantics<parallel>, #tpu.dimension_semantics<arbitrary>], iteration_bounds = array<i64: 1, 1>, scalar_prefetch = 0 : i64, scratch_operands = 0 : i64, tpu.core_type = #tpu.core_type<tc>, window_params = [{transform_indices = @transform_0, window_bounds = array<i64: 4, 8, 32>}, {pipeline_mode = #tpu.pipeline_mode<synchronous>, transform_indices = @transform_1, window_bounds = array<i64: 32, 32>}, {pipeline_mode = #tpu.pipeline_mode<synchronous>, transform_indices = @transform_2, window_bounds = array<i64: 1, 32>}, {transform_indices = @transform_3, window_bounds = array<i64: 4, 8>}, {transform_indices = @transform_4, window_bounds = array<i64: 4, 8, 32>}, {transform_indices = @transform_5, window_bounds = array<i64: 4, 32>}]} {
    %c0 = arith.constant 0 : index
    %c0_0 = arith.constant 0 : index
    %c0_1 = arith.constant 0 : index
    %0 = vector.load %arg2[%c0, %c0_0, %c0_1] : memref<4x8x32xf32, #tpu.memory_space<vmem>>, vector<4x8x32xf32>
    %c0_i32 = arith.constant 0 : i32
    %1 = arith.cmpi eq, %arg1, %c0_i32 : i32
    %2 = arith.extui %1 : i1 to i32
    %c0_i32_2 = arith.constant 0 : i32
    %3 = arith.cmpi ne, %2, %c0_i32_2 : i32
    scf.if %3 {
      %cst_28 = arith.constant 0.000000e+00 : f32
      %57 = vector.broadcast %cst_28 : f32 to vector<4x32xf32>
      %c0_29 = arith.constant 0 : index
      %c0_30 = arith.constant 0 : index
      %58 = vector.load %arg7[%c0_29, %c0_30] : memref<4x32xf32, #tpu.memory_space<vmem>>, vector<4x32xf32>
      tpu.vector_store %arg7[%c0_29, %c0_30], %57 {strides = array<i32>} : memref<4x32xf32, #tpu.memory_space<vmem>>, vector<4x32xf32>,
    } else {
    }
    %c8_i32 = arith.constant 8 : i32
    %4 = arith.muli %arg1, %c8_i32 : i32
    %5 = tpu.iota {dimensions = array<i32: 1>} : vector<1x8x1xi32>
    %6 = vector.broadcast %4 : i32 to vector<1x8x1xi32>
    %7 = arith.addi %6, %5 : vector<1x8x1xi32>
    %c8_i32_3 = arith.constant 8 : i32
    %8 = vector.broadcast %c8_i32_3 : i32 to vector<1x8x1xi32>
    %9 = arith.cmpi slt, %7, %8 : vector<1x8x1xi32>
    %c0_4 = arith.constant 0 : index
    %c0_5 = arith.constant 0 : index
    %10 = vector.load %arg5[%c0_4, %c0_5] : memref<4x8xf32, #tpu.memory_space<vmem>>, vector<4x8xf32>
    %11 = vector.shape_cast %10 : vector<4x8xf32> to vector<4x8x1xf32>
    %12 = vector.broadcast %11 : vector<4x8x1xf32> to vector<4x8x32xf32>
    %13 = arith.mulf %0, %12 : vector<4x8x32xf32>
    %cst = arith.constant 0.000000e+00 : f32
    %14 = vector.shape_cast %9 : vector<1x8x1xi1> to vector<1x8x1xi1>
    %15 = vector.broadcast %14 : vector<1x8x1xi1> to vector<4x8x32xi1>
    %16 = vector.broadcast %cst : f32 to vector<4x8x32xf32>
    %17 = arith.select %15, %13, %16 : vector<4x8x32xi1>, vector<4x8x32xf32>
    %c0_6 = arith.constant 0 : index
    %c0_7 = arith.constant 0 : index
    %18 = vector.load %arg7[%c0_6, %c0_7] : memref<4x32xf32, #tpu.memory_space<vmem>>, vector<4x32xf32>
    %cst_8 = arith.constant dense<0.000000e+00> : vector<4x32xf32>
    %19 = vector.multi_reduction <add>, %17, %cst_8 [1] : vector<4x8x32xf32> to vector<4x32xf32>
    %20 = arith.addf %18, %19 : vector<4x32xf32>
    %c0_9 = arith.constant 0 : index
    %c0_10 = arith.constant 0 : index
    %21 = vector.load %arg7[%c0_9, %c0_10] : memref<4x32xf32, #tpu.memory_space<vmem>>, vector<4x32xf32>
    tpu.vector_store %arg7[%c0_9, %c0_10], %20 {strides = array<i32>} : memref<4x32xf32, #tpu.memory_space<vmem>>, vector<4x32xf32>,
    %22 = arith.truncf %0 : vector<4x8x32xf32> to vector<4x8x32xbf16>
    %c0_11 = arith.constant 0 : index
    %c0_12 = arith.constant 0 : index
    %23 = vector.load %arg3[%c0_11, %c0_12] : memref<32x32xbf16, #tpu.memory_space<vmem>>, vector<32x32xbf16>
    %c0_13 = arith.constant 0 : index
    %c0_14 = arith.constant 0 : index
    %24 = vector.load %arg4[%c0_13, %c0_14] : memref<1x32xf32, #tpu.memory_space<vmem>>, vector<1x32xf32>
    %25 = vector.extract_strided_slice %22 {offsets = [0, 0, 0], sizes = [1, 8, 32], strides = [1, 1, 1]} : vector<4x8x32xbf16> to vector<1x8x32xbf16>
    %26 = vector.shape_cast %25 : vector<1x8x32xbf16> to vector<8x32xbf16>
    %cst_15 = arith.constant dense<0.000000e+00> : vector<8x32xf32>
    %27 = tpu.matmul %26, %23, %cst_15 {dimension_numbers = #tpu.dot_dimension_numbers<[1], [0], [0], [1], [0, 0, 1, 1], [], []>} : vector<8x32xbf16>, vector<32x32xbf16>, vector<8x32xf32> -> vector<8x32xf32>
    %28 = vector.broadcast %24 : vector<1x32xf32> to vector<8x32xf32>
    %29 = arith.addf %27, %28 : vector<8x32xf32>
    %c0_16 = arith.constant 0 : index
    %c0_17 = arith.constant 0 : index
    %c0_18 = arith.constant 0 : index
    %30 = vector.load %arg6[%c0_16, %c0_17, %c0_18] : memref<4x8x32xf32, #tpu.memory_space<vmem>>, vector<1x8x32xf32>
    %31 = vector.shape_cast %30 : vector<1x8x32xf32> to vector<8x32xf32>
    %32 = vector.shape_cast %29 : vector<8x32xf32> to vector<1x8x32xf32>
    tpu.vector_store %arg6[%c0_16, %c0_17, %c0_18], %32 {strides = array<i32>} : memref<4x8x32xf32, #tpu.memory_space<vmem>>, vector<1x8x32xf32>,
    %33 = vector.extract_strided_slice %22 {offsets = [1, 0, 0], sizes = [1, 8, 32], strides = [1, 1, 1]} : vector<4x8x32xbf16> to vector<1x8x32xbf16>
    %34 = vector.shape_cast %33 : vector<1x8x32xbf16> to vector<8x32xbf16>
    %cst_19 = arith.constant dense<0.000000e+00> : vector<8x32xf32>
    %35 = tpu.matmul %34, %23, %cst_19 {dimension_numbers = #tpu.dot_dimension_numbers<[1], [0], [0], [1], [0, 0, 1, 1], [], []>} : vector<8x32xbf16>, vector<32x32xbf16>, vector<8x32xf32> -> vector<8x32xf32>
    %36 = vector.broadcast %24 : vector<1x32xf32> to vector<8x32xf32>
    %37 = arith.addf %35, %36 : vector<8x32xf32>
    %c1 = arith.constant 1 : index
    %c0_20 = arith.constant 0 : index
    %c0_21 = arith.constant 0 : index
    %38 = vector.load %arg6[%c1, %c0_20, %c0_21] : memref<4x8x32xf32, #tpu.memory_space<vmem>>, vector<1x8x32xf32>
    %39 = vector.shape_cast %38 : vector<1x8x32xf32> to vector<8x32xf32>
    %40 = vector.shape_cast %37 : vector<8x32xf32> to vector<1x8x32xf32>
    tpu.vector_store %arg6[%c1, %c0_20, %c0_21], %40 {strides = array<i32>} : memref<4x8x32xf32, #tpu.memory_space<vmem>>, vector<1x8x32xf32>,
    %41 = vector.extract_strided_slice %22 {offsets = [2, 0, 0], sizes = [1, 8, 32], strides = [1, 1, 1]} : vector<4x8x32xbf16> to vector<1x8x32xbf16>
    %42 = vector.shape_cast %41 : vector<1x8x32xbf16> to vector<8x32xbf16>
    %cst_22 = arith.constant dense<0.000000e+00> : vector<8x32xf32>
    %43 = tpu.matmul %42, %23, %cst_22 {dimension_numbers = #tpu.dot_dimension_numbers<[1], [0], [0], [1], [0, 0, 1, 1], [], []>} : vector<8x32xbf16>, vector<32x32xbf16>, vector<8x32xf32> -> vector<8x32xf32>
    %44 = vector.broadcast %24 : vector<1x32xf32> to vector<8x32xf32>
    %45 = arith.addf %43, %44 : vector<8x32xf32>
    %c2 = arith.constant 2 : index
    %c0_23 = arith.constant 0 : index
    %c0_24 = arith.constant 0 : index
    %46 = vector.load %arg6[%c2, %c0_23, %c0_24] : memref<4x8x32xf32, #tpu.memory_space<vmem>>, vector<1x8x32xf32>
    %47 = vector.shape_cast %46 : vector<1x8x32xf32> to vector<8x32xf32>
    %48 = vector.shape_cast %45 : vector<8x32xf32> to vector<1x8x32xf32>
    tpu.vector_store %arg6[%c2, %c0_23, %c0_24], %48 {strides = array<i32>} : memref<4x8x32xf32, #tpu.memory_space<vmem>>, vector<1x8x32xf32>,
    %49 = vector.extract_strided_slice %22 {offsets = [3, 0, 0], sizes = [1, 8, 32], strides = [1, 1, 1]} : vector<4x8x32xbf16> to vector<1x8x32xbf16>
    %50 = vector.shape_cast %49 : vector<1x8x32xbf16> to vector<8x32xbf16>
    %cst_25 = arith.constant dense<0.000000e+00> : vector<8x32xf32>
    %51 = tpu.matmul %50, %23, %cst_25 {dimension_numbers = #tpu.dot_dimension_numbers<[1], [0], [0], [1], [0, 0, 1, 1], [], []>} : vector<8x32xbf16>, vector<32x32xbf16>, vector<8x32xf32> -> vector<8x32xf32>
    %52 = vector.broadcast %24 : vector<1x32xf32> to vector<8x32xf32>
    %53 = arith.addf %51, %52 : vector<8x32xf32>
    %c3 = arith.constant 3 : index
    %c0_26 = arith.constant 0 : index
    %c0_27 = arith.constant 0 : index
    %54 = vector.load %arg6[%c3, %c0_26, %c0_27] : memref<4x8x32xf32, #tpu.memory_space<vmem>>, vector<1x8x32xf32>
    %55 = vector.shape_cast %54 : vector<1x8x32xf32> to vector<8x32xf32>
    %56 = vector.shape_cast %53 : vector<8x32xf32> to vector<1x8x32xf32>
    tpu.vector_store %arg6[%c3, %c0_26, %c0_27], %56 {strides = array<i32>} : memref<4x8x32xf32, #tpu.memory_space<vmem>>, vector<1x8x32xf32>,
    return
  }
  func.func @transform_0(%arg0: i32, %arg1: i32) -> (i32, i32, i32) {
    %c0_i32 = arith.constant 0 : i32
    %c0_i32_0 = arith.constant 0 : i32
    return %arg0, %arg1, %c0_i32 : i32, i32, i32
  }
  func.func @transform_1(%arg0: i32, %arg1: i32) -> (i32, i32) {
    %c0_i32 = arith.constant 0 : i32
    %c0_i32_0 = arith.constant 0 : i32
    %c0_i32_1 = arith.constant 0 : i32
    return %c0_i32, %c0_i32_0 : i32, i32
  }
  func.func @transform_2(%arg0: i32, %arg1: i32) -> (i32, i32) {
    %c0_i32 = arith.constant 0 : i32
    %c0_i32_0 = arith.constant 0 : i32
    %c0_i32_1 = arith.constant 0 : i32
    return %c0_i32, %c0_i32_0 : i32, i32
  }
  func.func @transform_3(%arg0: i32, %arg1: i32) -> (i32, i32) {
    %c0_i32 = arith.constant 0 : i32
    return %arg0, %arg1 : i32, i32
  }
  func.func @transform_4(%arg0: i32, %arg1: i32) -> (i32, i32, i32) {
    %c0_i32 = arith.constant 0 : i32
    %c0_i32_0 = arith.constant 0 : i32
    return %arg0, %arg1, %c0_i32 : i32, i32, i32
  }
  func.func @transform_5(%arg0: i32, %arg1: i32) -> (i32, i32) {
    %c0_i32 = arith.constant 0 : i32
    %c0_i32_0 = arith.constant 0 : i32
    return %arg0, %c0_i32 : i32, i32
  }
}

module attributes {stable_mosaic.version = 11 : i64} {
  func.func @kernel(%arg0: i32, %arg1: i32, %arg2: memref<4x16x32xf32, #tpu.memory_space<vmem>>, %arg3: memref<32x32xbf16, #tpu.memory_space<vmem>>, %arg4: memref<1x32xf32, #tpu.memory_space<vmem>>, %arg5: memref<4x16xf32, #tpu.memory_space<vmem>>, %arg6: memref<4x16x32xf32, #tpu.memory_space<vmem>>, %arg7: memref<4x32xf32, #tpu.memory_space<vmem>>) attributes {dimension_semantics = [#tpu.dimension_semantics<parallel>, #tpu.dimension_semantics<arbitrary>], iteration_bounds = array<i64: 1, 1>, scalar_prefetch = 0 : i64, scratch_operands = 0 : i64, tpu.core_type = #tpu.core_type<tc>, window_params = [{transform_indices = @transform_0, window_bounds = array<i64: 4, 16, 32>}, {pipeline_mode = #tpu.pipeline_mode<synchronous>, transform_indices = @transform_1, window_bounds = array<i64: 32, 32>}, {pipeline_mode = #tpu.pipeline_mode<synchronous>, transform_indices = @transform_2, window_bounds = array<i64: 1, 32>}, {transform_indices = @transform_3, window_bounds = array<i64: 4, 16>}, {transform_indices = @transform_4, window_bounds = array<i64: 4, 16, 32>}, {transform_indices = @transform_5, window_bounds = array<i64: 4, 32>}]} {
    %c0 = arith.constant 0 : index
    %c0_0 = arith.constant 0 : index
    %c0_1 = arith.constant 0 : index
    %0 = vector.load %arg2[%c0, %c0_0, %c0_1] : memref<4x16x32xf32, #tpu.memory_space<vmem>>, vector<4x16x32xf32>
    %c0_i32 = arith.constant 0 : i32
    %1 = arith.cmpi eq, %arg1, %c0_i32 : i32
    %2 = arith.extui %1 : i1 to i32
    %c0_i32_2 = arith.constant 0 : i32
    %3 = arith.cmpi ne, %2, %c0_i32_2 : i32
    scf.if %3 {
      %cst_28 = arith.constant 0.000000e+00 : f32
      %57 = vector.broadcast %cst_28 : f32 to vector<4x32xf32>
      %c0_29 = arith.constant 0 : index
      %c0_30 = arith.constant 0 : index
      %58 = vector.load %arg7[%c0_29, %c0_30] : memref<4x32xf32, #tpu.memory_space<vmem>>, vector<4x32xf32>
      tpu.vector_store %arg7[%c0_29, %c0_30], %57 {strides = array<i32>} : memref<4x32xf32, #tpu.memory_space<vmem>>, vector<4x32xf32>,
    } else {
    }
    %c16_i32 = arith.constant 16 : i32
    %4 = arith.muli %arg1, %c16_i32 : i32
    %5 = tpu.iota {dimensions = array<i32: 1>} : vector<1x16x1xi32>
    %6 = vector.broadcast %4 : i32 to vector<1x16x1xi32>
    %7 = arith.addi %6, %5 : vector<1x16x1xi32>
    %c16_i32_3 = arith.constant 16 : i32
    %8 = vector.broadcast %c16_i32_3 : i32 to vector<1x16x1xi32>
    %9 = arith.cmpi slt, %7, %8 : vector<1x16x1xi32>
    %c0_4 = arith.constant 0 : index
    %c0_5 = arith.constant 0 : index
    %10 = vector.load %arg5[%c0_4, %c0_5] : memref<4x16xf32, #tpu.memory_space<vmem>>, vector<4x16xf32>
    %11 = vector.shape_cast %10 : vector<4x16xf32> to vector<4x16x1xf32>
    %12 = vector.broadcast %11 : vector<4x16x1xf32> to vector<4x16x32xf32>
    %13 = arith.mulf %0, %12 : vector<4x16x32xf32>
    %cst = arith.constant 0.000000e+00 : f32
    %14 = vector.shape_cast %9 : vector<1x16x1xi1> to vector<1x16x1xi1>
    %15 = vector.broadcast %14 : vector<1x16x1xi1> to vector<4x16x32xi1>
    %16 = vector.broadcast %cst : f32 to vector<4x16x32xf32>
    %17 = arith.select %15, %13, %16 : vector<4x16x32xi1>, vector<4x16x32xf32>
    %c0_6 = arith.constant 0 : index
    %c0_7 = arith.constant 0 : index
    %18 = vector.load %arg7[%c0_6, %c0_7] : memref<4x32xf32, #tpu.memory_space<vmem>>, vector<4x32xf32>
    %cst_8 = arith.constant dense<0.000000e+00> : vector<4x32xf32>
    %19 = vector.multi_reduction <add>, %17, %cst_8 [1] : vector<4x16x32xf32> to vector<4x32xf32>
    %20 = arith.addf %18, %19 : vector<4x32xf32>
    %c0_9 = arith.constant 0 : index
    %c0_10 = arith.constant 0 : index
    %21 = vector.load %arg7[%c0_9, %c0_10] : memref<4x32xf32, #tpu.memory_space<vmem>>, vector<4x32xf32>
    tpu.vector_store %arg7[%c0_9, %c0_10], %20 {strides = array<i32>} : memref<4x32xf32, #tpu.memory_space<vmem>>, vector<4x32xf32>,
    %22 = arith.truncf %0 : vector<4x16x32xf32> to vector<4x16x32xbf16>
    %c0_11 = arith.constant 0 : index
    %c0_12 = arith.constant 0 : index
    %23 = vector.load %arg3[%c0_11, %c0_12] : memref<32x32xbf16, #tpu.memory_space<vmem>>, vector<32x32xbf16>
    %c0_13 = arith.constant 0 : index
    %c0_14 = arith.constant 0 : index
    %24 = vector.load %arg4[%c0_13, %c0_14] : memref<1x32xf32, #tpu.memory_space<vmem>>, vector<1x32xf32>
    %25 = vector.extract_strided_slice %22 {offsets = [0, 0, 0], sizes = [1, 16, 32], strides = [1, 1, 1]} : vector<4x16x32xbf16> to vector<1x16x32xbf16>
    %26 = vector.shape_cast %25 : vector<1x16x32xbf16> to vector<16x32xbf16>
    %cst_15 = arith.constant dense<0.000000e+00> : vector<16x32xf32>
    %27 = tpu.matmul %26, %23, %cst_15 {dimension_numbers = #tpu.dot_dimension_numbers<[1], [0], [0], [1], [0, 0, 1, 1], [], []>} : vector<16x32xbf16>, vector<32x32xbf16>, vector<16x32xf32> -> vector<16x32xf32>
    %28 = vector.broadcast %24 : vector<1x32xf32> to vector<16x32xf32>
    %29 = arith.addf %27, %28 : vector<16x32xf32>
    %c0_16 = arith.constant 0 : index
    %c0_17 = arith.constant 0 : index
    %c0_18 = arith.constant 0 : index
    %30 = vector.load %arg6[%c0_16, %c0_17, %c0_18] : memref<4x16x32xf32, #tpu.memory_space<vmem>>, vector<1x16x32xf32>
    %31 = vector.shape_cast %30 : vector<1x16x32xf32> to vector<16x32xf32>
    %32 = vector.shape_cast %29 : vector<16x32xf32> to vector<1x16x32xf32>
    tpu.vector_store %arg6[%c0_16, %c0_17, %c0_18], %32 {strides = array<i32>} : memref<4x16x32xf32, #tpu.memory_space<vmem>>, vector<1x16x32xf32>,
    %33 = vector.extract_strided_slice %22 {offsets = [1, 0, 0], sizes = [1, 16, 32], strides = [1, 1, 1]} : vector<4x16x32xbf16> to vector<1x16x32xbf16>
    %34 = vector.shape_cast %33 : vector<1x16x32xbf16> to vector<16x32xbf16>
    %cst_19 = arith.constant dense<0.000000e+00> : vector<16x32xf32>
    %35 = tpu.matmul %34, %23, %cst_19 {dimension_numbers = #tpu.dot_dimension_numbers<[1], [0], [0], [1], [0, 0, 1, 1], [], []>} : vector<16x32xbf16>, vector<32x32xbf16>, vector<16x32xf32> -> vector<16x32xf32>
    %36 = vector.broadcast %24 : vector<1x32xf32> to vector<16x32xf32>
    %37 = arith.addf %35, %36 : vector<16x32xf32>
    %c1 = arith.constant 1 : index
    %c0_20 = arith.constant 0 : index
    %c0_21 = arith.constant 0 : index
    %38 = vector.load %arg6[%c1, %c0_20, %c0_21] : memref<4x16x32xf32, #tpu.memory_space<vmem>>, vector<1x16x32xf32>
    %39 = vector.shape_cast %38 : vector<1x16x32xf32> to vector<16x32xf32>
    %40 = vector.shape_cast %37 : vector<16x32xf32> to vector<1x16x32xf32>
    tpu.vector_store %arg6[%c1, %c0_20, %c0_21], %40 {strides = array<i32>} : memref<4x16x32xf32, #tpu.memory_space<vmem>>, vector<1x16x32xf32>,
    %41 = vector.extract_strided_slice %22 {offsets = [2, 0, 0], sizes = [1, 16, 32], strides = [1, 1, 1]} : vector<4x16x32xbf16> to vector<1x16x32xbf16>
    %42 = vector.shape_cast %41 : vector<1x16x32xbf16> to vector<16x32xbf16>
    %cst_22 = arith.constant dense<0.000000e+00> : vector<16x32xf32>
    %43 = tpu.matmul %42, %23, %cst_22 {dimension_numbers = #tpu.dot_dimension_numbers<[1], [0], [0], [1], [0, 0, 1, 1], [], []>} : vector<16x32xbf16>, vector<32x32xbf16>, vector<16x32xf32> -> vector<16x32xf32>
    %44 = vector.broadcast %24 : vector<1x32xf32> to vector<16x32xf32>
    %45 = arith.addf %43, %44 : vector<16x32xf32>
    %c2 = arith.constant 2 : index
    %c0_23 = arith.constant 0 : index
    %c0_24 = arith.constant 0 : index
    %46 = vector.load %arg6[%c2, %c0_23, %c0_24] : memref<4x16x32xf32, #tpu.memory_space<vmem>>, vector<1x16x32xf32>
    %47 = vector.shape_cast %46 : vector<1x16x32xf32> to vector<16x32xf32>
    %48 = vector.shape_cast %45 : vector<16x32xf32> to vector<1x16x32xf32>
    tpu.vector_store %arg6[%c2, %c0_23, %c0_24], %48 {strides = array<i32>} : memref<4x16x32xf32, #tpu.memory_space<vmem>>, vector<1x16x32xf32>,
    %49 = vector.extract_strided_slice %22 {offsets = [3, 0, 0], sizes = [1, 16, 32], strides = [1, 1, 1]} : vector<4x16x32xbf16> to vector<1x16x32xbf16>
    %50 = vector.shape_cast %49 : vector<1x16x32xbf16> to vector<16x32xbf16>
    %cst_25 = arith.constant dense<0.000000e+00> : vector<16x32xf32>
    %51 = tpu.matmul %50, %23, %cst_25 {dimension_numbers = #tpu.dot_dimension_numbers<[1], [0], [0], [1], [0, 0, 1, 1], [], []>} : vector<16x32xbf16>, vector<32x32xbf16>, vector<16x32xf32> -> vector<16x32xf32>
    %52 = vector.broadcast %24 : vector<1x32xf32> to vector<16x32xf32>
    %53 = arith.addf %51, %52 : vector<16x32xf32>
    %c3 = arith.constant 3 : index
    %c0_26 = arith.constant 0 : index
    %c0_27 = arith.constant 0 : index
    %54 = vector.load %arg6[%c3, %c0_26, %c0_27] : memref<4x16x32xf32, #tpu.memory_space<vmem>>, vector<1x16x32xf32>
    %55 = vector.shape_cast %54 : vector<1x16x32xf32> to vector<16x32xf32>
    %56 = vector.shape_cast %53 : vector<16x32xf32> to vector<1x16x32xf32>
    tpu.vector_store %arg6[%c3, %c0_26, %c0_27], %56 {strides = array<i32>} : memref<4x16x32xf32, #tpu.memory_space<vmem>>, vector<1x16x32xf32>,
    return
  }
  func.func @transform_0(%arg0: i32, %arg1: i32) -> (i32, i32, i32) {
    %c0_i32 = arith.constant 0 : i32
    %c0_i32_0 = arith.constant 0 : i32
    return %arg0, %arg1, %c0_i32 : i32, i32, i32
  }
  func.func @transform_1(%arg0: i32, %arg1: i32) -> (i32, i32) {
    %c0_i32 = arith.constant 0 : i32
    %c0_i32_0 = arith.constant 0 : i32
    %c0_i32_1 = arith.constant 0 : i32
    return %c0_i32, %c0_i32_0 : i32, i32
  }
  func.func @transform_2(%arg0: i32, %arg1: i32) -> (i32, i32) {
    %c0_i32 = arith.constant 0 : i32
    %c0_i32_0 = arith.constant 0 : i32
    %c0_i32_1 = arith.constant 0 : i32
    return %c0_i32, %c0_i32_0 : i32, i32
  }
  func.func @transform_3(%arg0: i32, %arg1: i32) -> (i32, i32) {
    %c0_i32 = arith.constant 0 : i32
    return %arg0, %arg1 : i32, i32
  }
  func.func @transform_4(%arg0: i32, %arg1: i32) -> (i32, i32, i32) {
    %c0_i32 = arith.constant 0 : i32
    %c0_i32_0 = arith.constant 0 : i32
    return %arg0, %arg1, %c0_i32 : i32, i32, i32
  }
  func.func @transform_5(%arg0: i32, %arg1: i32) -> (i32, i32) {
    %c0_i32 = arith.constant 0 : i32
    %c0_i32_0 = arith.constant 0 : i32
    return %arg0, %c0_i32 : i32, i32
  }
}

module attributes {stable_mosaic.version = 11 : i64} {
  func.func @_feat_head_kernel(%arg0: i32, %arg1: memref<1x4x32xf32, #tpu.memory_space<vmem>>, %arg2: memref<1x4x1xf32, #tpu.memory_space<vmem>>, %arg3: memref<1x32x32xf32, #tpu.memory_space<vmem>>, %arg4: memref<1x1x32xf32, #tpu.memory_space<vmem>>, %arg5: memref<1x32x32xf32, #tpu.memory_space<vmem>>, %arg6: memref<1x1x32xf32, #tpu.memory_space<vmem>>, %arg7: memref<1x4x32xf32, #tpu.memory_space<vmem>>) attributes {dimension_semantics = [#tpu.dimension_semantics<parallel>], iteration_bounds = array<i64: 4>, scalar_prefetch = 0 : i64, scratch_operands = 0 : i64, tpu.core_type = #tpu.core_type<tc>, window_params = [{transform_indices = @transform_0, window_bounds = array<i64: 1, 4, 32>}, {transform_indices = @transform_1, window_bounds = array<i64: 1, 4, 1>}, {transform_indices = @transform_2, window_bounds = array<i64: 1, 32, 32>}, {transform_indices = @transform_3, window_bounds = array<i64: 1, 1, 32>}, {transform_indices = @transform_4, window_bounds = array<i64: 1, 32, 32>}, {transform_indices = @transform_5, window_bounds = array<i64: 1, 1, 32>}, {transform_indices = @transform_6, window_bounds = array<i64: 1, 4, 32>}]} {
    %c0 = arith.constant 0 : index
    %c0_0 = arith.constant 0 : index
    %c0_1 = arith.constant 0 : index
    %0 = vector.load %arg1[%c0, %c0_0, %c0_1] : memref<1x4x32xf32, #tpu.memory_space<vmem>>, vector<1x4x32xf32>
    %1 = vector.shape_cast %0 : vector<1x4x32xf32> to vector<4x32xf32>
    %c0_2 = arith.constant 0 : index
    %c0_3 = arith.constant 0 : index
    %c0_4 = arith.constant 0 : index
    %2 = vector.load %arg3[%c0_2, %c0_3, %c0_4] : memref<1x32x32xf32, #tpu.memory_space<vmem>>, vector<1x32x32xf32>
    %3 = vector.shape_cast %2 : vector<1x32x32xf32> to vector<32x32xf32>
    %cst = arith.constant dense<0.000000e+00> : vector<4x32xf32>
    %4 = tpu.matmul %1, %3, %cst {dimension_numbers = #tpu.dot_dimension_numbers<[1], [0], [0], [1], [0, 0, 1, 1], [], []>} : vector<4x32xf32>, vector<32x32xf32>, vector<4x32xf32> -> vector<4x32xf32>
    %c0_5 = arith.constant 0 : index
    %c0_6 = arith.constant 0 : index
    %c0_7 = arith.constant 0 : index
    %5 = vector.load %arg2[%c0_5, %c0_6, %c0_7] : memref<1x4x1xf32, #tpu.memory_space<vmem>>, vector<1x4x1xf32>
    %6 = vector.shape_cast %5 : vector<1x4x1xf32> to vector<4x1xf32>
    %c0_8 = arith.constant 0 : index
    %c0_9 = arith.constant 0 : index
    %c0_10 = arith.constant 0 : index
    %7 = vector.load %arg4[%c0_8, %c0_9, %c0_10] : memref<1x1x32xf32, #tpu.memory_space<vmem>>, vector<1x1x32xf32>
    %8 = vector.shape_cast %7 : vector<1x1x32xf32> to vector<1x32xf32>
    %9 = vector.broadcast %6 : vector<4x1xf32> to vector<4x32xf32>
    %10 = vector.broadcast %8 : vector<1x32xf32> to vector<4x32xf32>
    %11 = arith.mulf %9, %10 : vector<4x32xf32>
    %12 = arith.addf %4, %11 : vector<4x32xf32>
    %c0_11 = arith.constant 0 : index
    %c0_12 = arith.constant 0 : index
    %c0_13 = arith.constant 0 : index
    %13 = vector.load %arg5[%c0_11, %c0_12, %c0_13] : memref<1x32x32xf32, #tpu.memory_space<vmem>>, vector<1x32x32xf32>
    %14 = vector.shape_cast %13 : vector<1x32x32xf32> to vector<32x32xf32>
    %cst_14 = arith.constant dense<0.000000e+00> : vector<4x32xf32>
    %15 = tpu.matmul %12, %14, %cst_14 {dimension_numbers = #tpu.dot_dimension_numbers<[1], [0], [0], [1], [0, 0, 1, 1], [], []>} : vector<4x32xf32>, vector<32x32xf32>, vector<4x32xf32> -> vector<4x32xf32>
    %c0_15 = arith.constant 0 : index
    %c0_16 = arith.constant 0 : index
    %c0_17 = arith.constant 0 : index
    %16 = vector.load %arg6[%c0_15, %c0_16, %c0_17] : memref<1x1x32xf32, #tpu.memory_space<vmem>>, vector<1x1x32xf32>
    %17 = vector.shape_cast %16 : vector<1x1x32xf32> to vector<1x32xf32>
    %18 = vector.broadcast %17 : vector<1x32xf32> to vector<4x32xf32>
    %19 = arith.addf %15, %18 : vector<4x32xf32>
    %20 = arith.mulf %19, %19 : vector<4x32xf32>
    %cst_18 = arith.constant dense<0.000000e+00> : vector<4xf32>
    %21 = vector.multi_reduction <add>, %20, %cst_18 [1] : vector<4x32xf32> to vector<4xf32>
    %22 = vector.shape_cast %21 : vector<4xf32> to vector<4x1xf32>
    %cst_19 = arith.constant 1.000000e-24 : f32
    %23 = vector.broadcast %cst_19 : f32 to vector<4x1xf32>
    %24 = arith.maximumf %22, %23 : vector<4x1xf32>
    %25 = math.rsqrt %24 : vector<4x1xf32>
    %26 = vector.broadcast %25 : vector<4x1xf32> to vector<4x32xf32>
    %27 = arith.mulf %19, %26 : vector<4x32xf32>
    %c0_20 = arith.constant 0 : index
    %c0_21 = arith.constant 0 : index
    %c0_22 = arith.constant 0 : index
    %28 = vector.load %arg7[%c0_20, %c0_21, %c0_22] : memref<1x4x32xf32, #tpu.memory_space<vmem>>, vector<1x4x32xf32>
    %29 = vector.shape_cast %28 : vector<1x4x32xf32> to vector<4x32xf32>
    %30 = vector.shape_cast %27 : vector<4x32xf32> to vector<1x4x32xf32>
    tpu.vector_store %arg7[%c0_20, %c0_21, %c0_22], %30 {strides = array<i32>} : memref<1x4x32xf32, #tpu.memory_space<vmem>>, vector<1x4x32xf32>,
    return
  }
  func.func @transform_0(%arg0: i32) -> (i32, i32, i32) {
    %c0_i32 = arith.constant 0 : i32
    %c0_i32_0 = arith.constant 0 : i32
    %c0_i32_1 = arith.constant 0 : i32
    return %arg0, %c0_i32, %c0_i32_0 : i32, i32, i32
  }
  func.func @transform_1(%arg0: i32) -> (i32, i32, i32) {
    %c0_i32 = arith.constant 0 : i32
    %c0_i32_0 = arith.constant 0 : i32
    %c0_i32_1 = arith.constant 0 : i32
    return %arg0, %c0_i32, %c0_i32_0 : i32, i32, i32
  }
  func.func @transform_2(%arg0: i32) -> (i32, i32, i32) {
    %c0_i32 = arith.constant 0 : i32
    %c0_i32_0 = arith.constant 0 : i32
    %c0_i32_1 = arith.constant 0 : i32
    return %arg0, %c0_i32, %c0_i32_0 : i32, i32, i32
  }
  func.func @transform_3(%arg0: i32) -> (i32, i32, i32) {
    %c0_i32 = arith.constant 0 : i32
    %c0_i32_0 = arith.constant 0 : i32
    %c0_i32_1 = arith.constant 0 : i32
    return %arg0, %c0_i32, %c0_i32_0 : i32, i32, i32
  }
  func.func @transform_4(%arg0: i32) -> (i32, i32, i32) {
    %c0_i32 = arith.constant 0 : i32
    %c0_i32_0 = arith.constant 0 : i32
    %c0_i32_1 = arith.constant 0 : i32
    return %arg0, %c0_i32, %c0_i32_0 : i32, i32, i32
  }
  func.func @transform_5(%arg0: i32) -> (i32, i32, i32) {
    %c0_i32 = arith.constant 0 : i32
    %c0_i32_0 = arith.constant 0 : i32
    %c0_i32_1 = arith.constant 0 : i32
    return %arg0, %c0_i32, %c0_i32_0 : i32, i32, i32
  }
  func.func @transform_6(%arg0: i32) -> (i32, i32, i32) {
    %c0_i32 = arith.constant 0 : i32
    %c0_i32_0 = arith.constant 0 : i32
    %c0_i32_1 = arith.constant 0 : i32
    return %arg0, %c0_i32, %c0_i32_0 : i32, i32, i32
  }
}

module attributes {stable_mosaic.version = 11 : i64} {
  func.func @kernel(%arg0: i32, %arg1: i32, %arg2: memref<4x32xbf16, #tpu.memory_space<vmem>>, %arg3: memref<4x32xbf16, #tpu.memory_space<vmem>>, %arg4: memref<4x32xbf16, #tpu.memory_space<vmem>>, %arg5: memref<4x32xbf16, #tpu.memory_space<vmem>>, %arg6: memref<32x4xbf16, #tpu.memory_space<vmem>>, %arg7: memref<32x4xbf16, #tpu.memory_space<vmem>>, %arg8: memref<32x200xbf16, #tpu.memory_space<vmem>>, %arg9: memref<32x200xbf16, #tpu.memory_space<vmem>>, %arg10: memref<4x1xi32, #tpu.memory_space<vmem>>, %arg11: memref<1x4xi32, #tpu.memory_space<vmem>>, %arg12: memref<1x200xi32, #tpu.memory_space<vmem>>, %arg13: memref<1x2xf32, #tpu.memory_space<smem>>, %arg14: memref<4x1xf32, #tpu.memory_space<vmem>>, %arg15: memref<4x8xf32, #tpu.memory_space<vmem>>, %arg16: memref<4x8xf32, #tpu.memory_space<vmem>>) attributes {dimension_semantics = [#tpu.dimension_semantics<parallel>, #tpu.dimension_semantics<arbitrary>], iteration_bounds = array<i64: 1, 1>, scalar_prefetch = 0 : i64, scratch_operands = 2 : i64, tpu.core_type = #tpu.core_type<tc>, window_params = [{transform_indices = @transform_0, window_bounds = array<i64: 4, 32>}, {transform_indices = @transform_1, window_bounds = array<i64: 4, 32>}, {transform_indices = @transform_2, window_bounds = array<i64: 4, 32>}, {transform_indices = @transform_3, window_bounds = array<i64: 4, 32>}, {pipeline_mode = #tpu.pipeline_mode<synchronous>, transform_indices = @transform_4, window_bounds = array<i64: 32, 4>}, {pipeline_mode = #tpu.pipeline_mode<synchronous>, transform_indices = @transform_5, window_bounds = array<i64: 32, 4>}, {transform_indices = @transform_6, window_bounds = array<i64: 32, 200>}, {transform_indices = @transform_7, window_bounds = array<i64: 32, 200>}, {transform_indices = @transform_8, window_bounds = array<i64: 4, 1>}, {pipeline_mode = #tpu.pipeline_mode<synchronous>, transform_indices = @transform_9, window_bounds = array<i64: 1, 4>}, {transform_indices = @transform_10, window_bounds = array<i64: 1, 200>}, {transform_indices = @transform_11, window_bounds = array<i64: 1, 2>}, {transform_indices = @transform_12, window_bounds = array<i64: 4, 1>}]} {
    %c0 = arith.constant 0 : index
    %c1 = arith.constant 1 : index
    %0 = memref.load %arg13[%c0, %c1] : memref<1x2xf32, #tpu.memory_space<smem>>
    %c0_i32 = arith.constant 0 : i32
    %1 = arith.cmpi eq, %arg1, %c0_i32 : i32
    %2 = arith.extui %1 : i1 to i32
    %c0_i32_0 = arith.constant 0 : i32
    %3 = arith.cmpi ne, %2, %c0_i32_0 : i32
    scf.if %3 {
      %179 = tpu.iota {dimensions = array<i32: 1>} : vector<4x8xi32>
      %c0_i32_58 = arith.constant 0 : i32
      %180 = vector.broadcast %c0_i32_58 : i32 to vector<4x8xi32>
      %181 = arith.cmpi eq, %179, %180 : vector<4x8xi32>
      %c2_i32 = arith.constant 2 : i32
      %182 = vector.broadcast %c2_i32 : i32 to vector<4x8xi32>
      %183 = arith.cmpi eq, %179, %182 : vector<4x8xi32>
      %184 = arith.ori %181, %183 : vector<4x8xi1>
      %cst_59 = arith.constant -1.000000e+30 : f32
      %cst_60 = arith.constant 0.000000e+00 : f32
      %185 = vector.broadcast %cst_59 : f32 to vector<4x8xf32>
      %186 = vector.broadcast %cst_60 : f32 to vector<4x8xf32>
      %187 = arith.select %184, %185, %186 : vector<4x8xi1>, vector<4x8xf32>
      %c0_61 = arith.constant 0 : index
      %c0_62 = arith.constant 0 : index
      %188 = vector.load %arg15[%c0_61, %c0_62] : memref<4x8xf32, #tpu.memory_space<vmem>>, vector<4x8xf32>
      tpu.vector_store %arg15[%c0_61, %c0_62], %187 {strides = array<i32>} : memref<4x8xf32, #tpu.memory_space<vmem>>, vector<4x8xf32>,
      %c0_63 = arith.constant 0 : index
      %c0_64 = arith.constant 0 : index
      %189 = vector.load %arg16[%c0_63, %c0_64] : memref<4x8xf32, #tpu.memory_space<vmem>>, vector<4x8xf32>
      tpu.vector_store %arg16[%c0_63, %c0_64], %187 {strides = array<i32>} : memref<4x8xf32, #tpu.memory_space<vmem>>, vector<4x8xf32>,
    } else {
    }
    %c0_1 = arith.constant 0 : index
    %c0_2 = arith.constant 0 : index
    %4 = vector.load %arg2[%c0_1, %c0_2] : memref<4x32xbf16, #tpu.memory_space<vmem>>, vector<4x32xbf16>
    %c0_3 = arith.constant 0 : index
    %c0_4 = arith.constant 0 : index
    %5 = vector.load %arg3[%c0_3, %c0_4] : memref<4x32xbf16, #tpu.memory_space<vmem>>, vector<4x32xbf16>
    %6 = tpu.concatenate %4, %5 in 0 : vector<4x32xbf16>, vector<4x32xbf16> -> vector<8x32xbf16>
    %c0_5 = arith.constant 0 : index
    %c0_6 = arith.constant 0 : index
    %7 = vector.load %arg4[%c0_5, %c0_6] : memref<4x32xbf16, #tpu.memory_space<vmem>>, vector<4x32xbf16>
    %c0_7 = arith.constant 0 : index
    %c0_8 = arith.constant 0 : index
    %8 = vector.load %arg5[%c0_7, %c0_8] : memref<4x32xbf16, #tpu.memory_space<vmem>>, vector<4x32xbf16>
    %9 = tpu.concatenate %7, %8 in 0 : vector<4x32xbf16>, vector<4x32xbf16> -> vector<8x32xbf16>
    %c0_i32_9 = arith.constant 0 : i32
    %10 = arith.cmpi eq, %arg1, %c0_i32_9 : i32
    %11 = arith.extui %10 : i1 to i32
    %c0_i32_10 = arith.constant 0 : i32
    %12 = arith.cmpi ne, %11, %c0_i32_10 : i32
    scf.if %12 {
      %true = arith.constant true
      %179 = vector.broadcast %true : i1 to vector<1x4xi1>
      %c0_58 = arith.constant 0 : index
      %c0_59 = arith.constant 0 : index
      %180 = vector.load %arg10[%c0_58, %c0_59] : memref<4x1xi32, #tpu.memory_space<vmem>>, vector<4x1xi32>
      %c0_60 = arith.constant 0 : index
      %c0_61 = arith.constant 0 : index
      %181 = vector.load %arg11[%c0_60, %c0_61] : memref<1x4xi32, #tpu.memory_space<vmem>>, vector<1x4xi32>
      %182 = vector.broadcast %180 : vector<4x1xi32> to vector<4x4xi32>
      %183 = vector.broadcast %181 : vector<1x4xi32> to vector<4x4xi32>
      %184 = arith.cmpi eq, %182, %183 : vector<4x4xi32>
      %185 = arith.extui %184 : vector<4x4xi1> to vector<4x4xi32>
      %186 = arith.sitofp %185 : vector<4x4xi32> to vector<4x4xf32>
      %c0_62 = arith.constant 0 : index
      %c0_63 = arith.constant 0 : index
      %187 = vector.load %arg6[%c0_62, %c0_63] : memref<32x4xbf16, #tpu.memory_space<vmem>>, vector<32x4xbf16>
      %cst_64 = arith.constant dense<0.000000e+00> : vector<8x4xf32>
      %188 = tpu.matmul %6, %187, %cst_64 {dimension_numbers = #tpu.dot_dimension_numbers<[1], [0], [0], [1], [0, 0, 1, 1], [], []>} : vector<8x32xbf16>, vector<32x4xbf16>, vector<8x4xf32> -> vector<8x4xf32>
      %189 = vector.broadcast %0 : f32 to vector<8x4xf32>
      %190 = arith.mulf %188, %189 : vector<8x4xf32>
      %c0_65 = arith.constant 0 : index
      %c0_66 = arith.constant 0 : index
      %191 = vector.load %arg7[%c0_65, %c0_66] : memref<32x4xbf16, #tpu.memory_space<vmem>>, vector<32x4xbf16>
      %cst_67 = arith.constant dense<0.000000e+00> : vector<8x4xf32>
      %192 = tpu.matmul %9, %191, %cst_67 {dimension_numbers = #tpu.dot_dimension_numbers<[1], [0], [0], [1], [0, 0, 1, 1], [], []>} : vector<8x32xbf16>, vector<32x4xbf16>, vector<8x4xf32> -> vector<8x4xf32>
      %193 = vector.broadcast %0 : f32 to vector<8x4xf32>
      %194 = arith.mulf %192, %193 : vector<8x4xf32>
      %195 = vector.extract_strided_slice %190 {offsets = [0, 0], sizes = [4, 4], strides = [1, 1]} : vector<8x4xf32> to vector<4x4xf32>
      %196 = vector.extract_strided_slice %190 {offsets = [4, 0], sizes = [4, 4], strides = [1, 1]} : vector<8x4xf32> to vector<4x4xf32>
      %cst_68 = arith.constant 0.000000e+00 : f32
      %197 = vector.shape_cast %179 : vector<1x4xi1> to vector<1x4xi1>
      %198 = vector.broadcast %197 : vector<1x4xi1> to vector<4x4xi1>
      %199 = vector.broadcast %cst_68 : f32 to vector<4x4xf32>
      %200 = arith.select %198, %195, %199 : vector<4x4xi1>, vector<4x4xf32>
      %c0_69 = arith.constant 0 : index
      %c0_70 = arith.constant 0 : index
      %201 = vector.load %arg15[%c0_69, %c0_70] : memref<4x8xf32, #tpu.memory_space<vmem>>, vector<4x8xf32>
      %202 = vector.extract_strided_slice %201 {offsets = [0, 0], sizes = [4, 1], strides = [1, 1]} : vector<4x8xf32> to vector<4x1xf32>
      %203 = vector.extract_strided_slice %201 {offsets = [0, 1], sizes = [4, 1], strides = [1, 1]} : vector<4x8xf32> to vector<4x1xf32>
      %204 = vector.extract_strided_slice %201 {offsets = [0, 2], sizes = [4, 1], strides = [1, 1]} : vector<4x8xf32> to vector<4x1xf32>
      %205 = vector.extract_strided_slice %201 {offsets = [0, 3], sizes = [4, 1], strides = [1, 1]} : vector<4x8xf32> to vector<4x1xf32>
      %206 = vector.extract_strided_slice %201 {offsets = [0, 4], sizes = [4, 1], strides = [1, 1]} : vector<4x8xf32> to vector<4x1xf32>
      %207 = vector.extract_strided_slice %201 {offsets = [0, 5], sizes = [4, 1], strides = [1, 1]} : vector<4x8xf32> to vector<4x1xf32>
      %208 = vector.extract_strided_slice %201 {offsets = [0, 6], sizes = [4, 1], strides = [1, 1]} : vector<4x8xf32> to vector<4x1xf32>
      %cst_71 = arith.constant -1.000000e+30 : f32
      %209 = vector.shape_cast %179 : vector<1x4xi1> to vector<1x4xi1>
      %210 = vector.broadcast %209 : vector<1x4xi1> to vector<4x4xi1>
      %211 = vector.broadcast %cst_71 : f32 to vector<4x4xf32>
      %212 = arith.select %210, %195, %211 : vector<4x4xi1>, vector<4x4xf32>
      %cst_72 = arith.constant dense<0xFF800000> : vector<4xf32>
      %213 = vector.multi_reduction <maximumf>, %212, %cst_72 [1] : vector<4x4xf32> to vector<4xf32>
      %214 = vector.shape_cast %213 : vector<4xf32> to vector<4x1xf32>
      %215 = arith.maximumf %202, %214 : vector<4x1xf32>
      %216 = vector.broadcast %215 : vector<4x1xf32> to vector<4x4xf32>
      %217 = arith.subf %195, %216 : vector<4x4xf32>
      %218 = math.exp %217 : vector<4x4xf32>
      %cst_73 = arith.constant 0.000000e+00 : f32
      %219 = vector.shape_cast %179 : vector<1x4xi1> to vector<1x4xi1>
      %220 = vector.broadcast %219 : vector<1x4xi1> to vector<4x4xi1>
      %221 = vector.broadcast %cst_73 : f32 to vector<4x4xf32>
      %222 = arith.select %220, %218, %221 : vector<4x4xi1>, vector<4x4xf32>
      %223 = arith.subf %202, %215 : vector<4x1xf32>
      %224 = math.exp %223 : vector<4x1xf32>
      %225 = arith.mulf %203, %224 : vector<4x1xf32>
      %cst_74 = arith.constant dense<0.000000e+00> : vector<4xf32>
      %226 = vector.multi_reduction <add>, %222, %cst_74 [1] : vector<4x4xf32> to vector<4xf32>
      %227 = vector.shape_cast %226 : vector<4xf32> to vector<4x1xf32>
      %228 = arith.addf %225, %227 : vector<4x1xf32>
      %cst_75 = arith.constant -1.000000e+30 : f32
      %229 = vector.shape_cast %179 : vector<1x4xi1> to vector<1x4xi1>
      %230 = vector.broadcast %229 : vector<1x4xi1> to vector<4x4xi1>
      %231 = vector.broadcast %cst_75 : f32 to vector<4x4xf32>
      %232 = arith.select %230, %196, %231 : vector<4x4xi1>, vector<4x4xf32>
      %cst_76 = arith.constant dense<0xFF800000> : vector<4xf32>
      %233 = vector.multi_reduction <maximumf>, %232, %cst_76 [1] : vector<4x4xf32> to vector<4xf32>
      %234 = vector.shape_cast %233 : vector<4xf32> to vector<4x1xf32>
      %235 = arith.maximumf %204, %234 : vector<4x1xf32>
      %236 = arith.subf %204, %235 : vector<4x1xf32>
      %237 = math.exp %236 : vector<4x1xf32>
      %238 = vector.broadcast %235 : vector<4x1xf32> to vector<4x4xf32>
      %239 = arith.subf %196, %238 : vector<4x4xf32>
      %240 = math.exp %239 : vector<4x4xf32>
      %cst_77 = arith.constant 0.000000e+00 : f32
      %241 = vector.shape_cast %179 : vector<1x4xi1> to vector<1x4xi1>
      %242 = vector.broadcast %241 : vector<1x4xi1> to vector<4x4xi1>
      %243 = vector.broadcast %cst_77 : f32 to vector<4x4xf32>
      %244 = arith.select %242, %240, %243 : vector<4x4xi1>, vector<4x4xf32>
      %245 = arith.mulf %205, %237 : vector<4x1xf32>
      %cst_78 = arith.constant dense<0.000000e+00> : vector<4xf32>
      %246 = vector.multi_reduction <add>, %244, %cst_78 [1] : vector<4x4xf32> to vector<4xf32>
      %247 = vector.shape_cast %246 : vector<4xf32> to vector<4x1xf32>
      %248 = arith.addf %245, %247 : vector<4x1xf32>
      %249 = arith.mulf %206, %237 : vector<4x1xf32>
      %250 = arith.mulf %244, %200 : vector<4x4xf32>
      %cst_79 = arith.constant dense<0.000000e+00> : vector<4xf32>
      %251 = vector.multi_reduction <add>, %250, %cst_79 [1] : vector<4x4xf32> to vector<4xf32>
      %252 = vector.shape_cast %251 : vector<4xf32> to vector<4x1xf32>
      %253 = arith.addf %249, %252 : vector<4x1xf32>
      %254 = arith.mulf %186, %200 : vector<4x4xf32>
      %cst_80 = arith.constant dense<0.000000e+00> : vector<4xf32>
      %255 = vector.multi_reduction <add>, %254, %cst_80 [1] : vector<4x4xf32> to vector<4xf32>
      %256 = vector.shape_cast %255 : vector<4xf32> to vector<4x1xf32>
      %257 = arith.addf %207, %256 : vector<4x1xf32>
      %cst_81 = arith.constant dense<0.000000e+00> : vector<4xf32>
      %258 = vector.multi_reduction <add>, %186, %cst_81 [1] : vector<4x4xf32> to vector<4xf32>
      %259 = vector.shape_cast %258 : vector<4xf32> to vector<4x1xf32>
      %260 = arith.addf %208, %259 : vector<4x1xf32>
      %cst_82 = arith.constant 0.000000e+00 : f32
      %261 = vector.broadcast %cst_82 : f32 to vector<4x1xf32>
      %262 = tpu.concatenate %215, %228, %235, %248, %253, %257, %260, %261 in 1 : vector<4x1xf32>, vector<4x1xf32>, vector<4x1xf32>, vector<4x1xf32>, vector<4x1xf32>, vector<4x1xf32>, vector<4x1xf32>, vector<4x1xf32> -> vector<4x8xf32>
      %c0_83 = arith.constant 0 : index
      %c0_84 = arith.constant 0 : index
      %263 = vector.load %arg15[%c0_83, %c0_84] : memref<4x8xf32, #tpu.memory_space<vmem>>, vector<4x8xf32>
      tpu.vector_store %arg15[%c0_83, %c0_84], %262 {strides = array<i32>} : memref<4x8xf32, #tpu.memory_space<vmem>>, vector<4x8xf32>,
      %264 = vector.extract_strided_slice %194 {offsets = [0, 0], sizes = [4, 4], strides = [1, 1]} : vector<8x4xf32> to vector<4x4xf32>
      %265 = vector.extract_strided_slice %194 {offsets = [4, 0], sizes = [4, 4], strides = [1, 1]} : vector<8x4xf32> to vector<4x4xf32>
      %cst_85 = arith.constant 0.000000e+00 : f32
      %266 = vector.shape_cast %179 : vector<1x4xi1> to vector<1x4xi1>
      %267 = vector.broadcast %266 : vector<1x4xi1> to vector<4x4xi1>
      %268 = vector.broadcast %cst_85 : f32 to vector<4x4xf32>
      %269 = arith.select %267, %264, %268 : vector<4x4xi1>, vector<4x4xf32>
      %c0_86 = arith.constant 0 : index
      %c0_87 = arith.constant 0 : index
      %270 = vector.load %arg16[%c0_86, %c0_87] : memref<4x8xf32, #tpu.memory_space<vmem>>, vector<4x8xf32>
      %271 = vector.extract_strided_slice %270 {offsets = [0, 0], sizes = [4, 1], strides = [1, 1]} : vector<4x8xf32> to vector<4x1xf32>
      %272 = vector.extract_strided_slice %270 {offsets = [0, 1], sizes = [4, 1], strides = [1, 1]} : vector<4x8xf32> to vector<4x1xf32>
      %273 = vector.extract_strided_slice %270 {offsets = [0, 2], sizes = [4, 1], strides = [1, 1]} : vector<4x8xf32> to vector<4x1xf32>
      %274 = vector.extract_strided_slice %270 {offsets = [0, 3], sizes = [4, 1], strides = [1, 1]} : vector<4x8xf32> to vector<4x1xf32>
      %275 = vector.extract_strided_slice %270 {offsets = [0, 4], sizes = [4, 1], strides = [1, 1]} : vector<4x8xf32> to vector<4x1xf32>
      %276 = vector.extract_strided_slice %270 {offsets = [0, 5], sizes = [4, 1], strides = [1, 1]} : vector<4x8xf32> to vector<4x1xf32>
      %277 = vector.extract_strided_slice %270 {offsets = [0, 6], sizes = [4, 1], strides = [1, 1]} : vector<4x8xf32> to vector<4x1xf32>
      %cst_88 = arith.constant -1.000000e+30 : f32
      %278 = vector.shape_cast %179 : vector<1x4xi1> to vector<1x4xi1>
      %279 = vector.broadcast %278 : vector<1x4xi1> to vector<4x4xi1>
      %280 = vector.broadcast %cst_88 : f32 to vector<4x4xf32>
      %281 = arith.select %279, %264, %280 : vector<4x4xi1>, vector<4x4xf32>
      %cst_89 = arith.constant dense<0xFF800000> : vector<4xf32>
      %282 = vector.multi_reduction <maximumf>, %281, %cst_89 [1] : vector<4x4xf32> to vector<4xf32>
      %283 = vector.shape_cast %282 : vector<4xf32> to vector<4x1xf32>
      %284 = arith.maximumf %271, %283 : vector<4x1xf32>
      %285 = vector.broadcast %284 : vector<4x1xf32> to vector<4x4xf32>
      %286 = arith.subf %264, %285 : vector<4x4xf32>
      %287 = math.exp %286 : vector<4x4xf32>
      %cst_90 = arith.constant 0.000000e+00 : f32
      %288 = vector.shape_cast %179 : vector<1x4xi1> to vector<1x4xi1>
      %289 = vector.broadcast %288 : vector<1x4xi1> to vector<4x4xi1>
      %290 = vector.broadcast %cst_90 : f32 to vector<4x4xf32>
      %291 = arith.select %289, %287, %290 : vector<4x4xi1>, vector<4x4xf32>
      %292 = arith.subf %271, %284 : vector<4x1xf32>
      %293 = math.exp %292 : vector<4x1xf32>
      %294 = arith.mulf %272, %293 : vector<4x1xf32>
      %cst_91 = arith.constant dense<0.000000e+00> : vector<4xf32>
      %295 = vector.multi_reduction <add>, %291, %cst_91 [1] : vector<4x4xf32> to vector<4xf32>
      %296 = vector.shape_cast %295 : vector<4xf32> to vector<4x1xf32>
      %297 = arith.addf %294, %296 : vector<4x1xf32>
      %cst_92 = arith.constant -1.000000e+30 : f32
      %298 = vector.shape_cast %179 : vector<1x4xi1> to vector<1x4xi1>
      %299 = vector.broadcast %298 : vector<1x4xi1> to vector<4x4xi1>
      %300 = vector.broadcast %cst_92 : f32 to vector<4x4xf32>
      %301 = arith.select %299, %265, %300 : vector<4x4xi1>, vector<4x4xf32>
      %cst_93 = arith.constant dense<0xFF800000> : vector<4xf32>
      %302 = vector.multi_reduction <maximumf>, %301, %cst_93 [1] : vector<4x4xf32> to vector<4xf32>
      %303 = vector.shape_cast %302 : vector<4xf32> to vector<4x1xf32>
      %304 = arith.maximumf %273, %303 : vector<4x1xf32>
      %305 = arith.subf %273, %304 : vector<4x1xf32>
      %306 = math.exp %305 : vector<4x1xf32>
      %307 = vector.broadcast %304 : vector<4x1xf32> to vector<4x4xf32>
      %308 = arith.subf %265, %307 : vector<4x4xf32>
      %309 = math.exp %308 : vector<4x4xf32>
      %cst_94 = arith.constant 0.000000e+00 : f32
      %310 = vector.shape_cast %179 : vector<1x4xi1> to vector<1x4xi1>
      %311 = vector.broadcast %310 : vector<1x4xi1> to vector<4x4xi1>
      %312 = vector.broadcast %cst_94 : f32 to vector<4x4xf32>
      %313 = arith.select %311, %309, %312 : vector<4x4xi1>, vector<4x4xf32>
      %314 = arith.mulf %274, %306 : vector<4x1xf32>
      %cst_95 = arith.constant dense<0.000000e+00> : vector<4xf32>
      %315 = vector.multi_reduction <add>, %313, %cst_95 [1] : vector<4x4xf32> to vector<4xf32>
      %316 = vector.shape_cast %315 : vector<4xf32> to vector<4x1xf32>
      %317 = arith.addf %314, %316 : vector<4x1xf32>
      %318 = arith.mulf %275, %306 : vector<4x1xf32>
      %319 = arith.mulf %313, %269 : vector<4x4xf32>
      %cst_96 = arith.constant dense<0.000000e+00> : vector<4xf32>
      %320 = vector.multi_reduction <add>, %319, %cst_96 [1] : vector<4x4xf32> to vector<4xf32>
      %321 = vector.shape_cast %320 : vector<4xf32> to vector<4x1xf32>
      %322 = arith.addf %318, %321 : vector<4x1xf32>
      %323 = arith.mulf %186, %269 : vector<4x4xf32>
      %cst_97 = arith.constant dense<0.000000e+00> : vector<4xf32>
      %324 = vector.multi_reduction <add>, %323, %cst_97 [1] : vector<4x4xf32> to vector<4xf32>
      %325 = vector.shape_cast %324 : vector<4xf32> to vector<4x1xf32>
      %326 = arith.addf %276, %325 : vector<4x1xf32>
      %cst_98 = arith.constant dense<0.000000e+00> : vector<4xf32>
      %327 = vector.multi_reduction <add>, %186, %cst_98 [1] : vector<4x4xf32> to vector<4xf32>
      %328 = vector.shape_cast %327 : vector<4xf32> to vector<4x1xf32>
      %329 = arith.addf %277, %328 : vector<4x1xf32>
      %cst_99 = arith.constant 0.000000e+00 : f32
      %330 = vector.broadcast %cst_99 : f32 to vector<4x1xf32>
      %331 = tpu.concatenate %284, %297, %304, %317, %322, %326, %329, %330 in 1 : vector<4x1xf32>, vector<4x1xf32>, vector<4x1xf32>, vector<4x1xf32>, vector<4x1xf32>, vector<4x1xf32>, vector<4x1xf32>, vector<4x1xf32> -> vector<4x8xf32>
      %c0_100 = arith.constant 0 : index
      %c0_101 = arith.constant 0 : index
      %332 = vector.load %arg16[%c0_100, %c0_101] : memref<4x8xf32, #tpu.memory_space<vmem>>, vector<4x8xf32>
      tpu.vector_store %arg16[%c0_100, %c0_101], %331 {strides = array<i32>} : memref<4x8xf32, #tpu.memory_space<vmem>>, vector<4x8xf32>,
    } else {
    }
    %c200_i32 = arith.constant 200 : i32
    %13 = arith.muli %arg1, %c200_i32 : i32
    %14 = tpu.iota {dimensions = array<i32: 1>} : vector<1x200xi32>
    %15 = vector.broadcast %13 : i32 to vector<1x200xi32>
    %16 = arith.addi %15, %14 : vector<1x200xi32>
    %c200_i32_11 = arith.constant 200 : i32
    %17 = vector.broadcast %c200_i32_11 : i32 to vector<1x200xi32>
    %18 = arith.cmpi slt, %16, %17 : vector<1x200xi32>
    %c0_12 = arith.constant 0 : index
    %c0_13 = arith.constant 0 : index
    %19 = vector.load %arg10[%c0_12, %c0_13] : memref<4x1xi32, #tpu.memory_space<vmem>>, vector<4x1xi32>
    %c0_14 = arith.constant 0 : index
    %c0_15 = arith.constant 0 : index
    %20 = vector.load %arg12[%c0_14, %c0_15] : memref<1x200xi32, #tpu.memory_space<vmem>>, vector<1x200xi32>
    %21 = vector.broadcast %19 : vector<4x1xi32> to vector<4x200xi32>
    %22 = vector.broadcast %20 : vector<1x200xi32> to vector<4x200xi32>
    %23 = arith.cmpi eq, %21, %22 : vector<4x200xi32>
    %24 = arith.extui %23 : vector<4x200xi1> to vector<4x200xi32>
    %25 = arith.sitofp %24 : vector<4x200xi32> to vector<4x200xf32>
    %cst = arith.constant 0.000000e+00 : f32
    %26 = vector.shape_cast %18 : vector<1x200xi1> to vector<1x200xi1>
    %27 = vector.broadcast %26 : vector<1x200xi1> to vector<4x200xi1>
    %28 = vector.broadcast %cst : f32 to vector<4x200xf32>
    %29 = arith.select %27, %25, %28 : vector<4x200xi1>, vector<4x200xf32>
    %c0_16 = arith.constant 0 : index
    %c0_17 = arith.constant 0 : index
    %30 = vector.load %arg8[%c0_16, %c0_17] : memref<32x200xbf16, #tpu.memory_space<vmem>>, vector<32x200xbf16>
    %cst_18 = arith.constant dense<0.000000e+00> : vector<8x200xf32>
    %31 = tpu.matmul %6, %30, %cst_18 {dimension_numbers = #tpu.dot_dimension_numbers<[1], [0], [0], [1], [0, 0, 1, 1], [], []>} : vector<8x32xbf16>, vector<32x200xbf16>, vector<8x200xf32> -> vector<8x200xf32>
    %32 = vector.broadcast %0 : f32 to vector<8x200xf32>
    %33 = arith.mulf %31, %32 : vector<8x200xf32>
    %c0_19 = arith.constant 0 : index
    %c0_20 = arith.constant 0 : index
    %34 = vector.load %arg9[%c0_19, %c0_20] : memref<32x200xbf16, #tpu.memory_space<vmem>>, vector<32x200xbf16>
    %cst_21 = arith.constant dense<0.000000e+00> : vector<8x200xf32>
    %35 = tpu.matmul %9, %34, %cst_21 {dimension_numbers = #tpu.dot_dimension_numbers<[1], [0], [0], [1], [0, 0, 1, 1], [], []>} : vector<8x32xbf16>, vector<32x200xbf16>, vector<8x200xf32> -> vector<8x200xf32>
    %36 = vector.broadcast %0 : f32 to vector<8x200xf32>
    %37 = arith.mulf %35, %36 : vector<8x200xf32>
    %38 = vector.extract_strided_slice %33 {offsets = [0, 0], sizes = [4, 200], strides = [1, 1]} : vector<8x200xf32> to vector<4x200xf32>
    %39 = vector.extract_strided_slice %33 {offsets = [4, 0], sizes = [4, 200], strides = [1, 1]} : vector<8x200xf32> to vector<4x200xf32>
    %cst_22 = arith.constant 0.000000e+00 : f32
    %40 = vector.shape_cast %18 : vector<1x200xi1> to vector<1x200xi1>
    %41 = vector.broadcast %40 : vector<1x200xi1> to vector<4x200xi1>
    %42 = vector.broadcast %cst_22 : f32 to vector<4x200xf32>
    %43 = arith.select %41, %38, %42 : vector<4x200xi1>, vector<4x200xf32>
    %c0_23 = arith.constant 0 : index
    %c0_24 = arith.constant 0 : index
    %44 = vector.load %arg15[%c0_23, %c0_24] : memref<4x8xf32, #tpu.memory_space<vmem>>, vector<4x8xf32>
    %45 = vector.extract_strided_slice %44 {offsets = [0, 0], sizes = [4, 1], strides = [1, 1]} : vector<4x8xf32> to vector<4x1xf32>
    %46 = vector.extract_strided_slice %44 {offsets = [0, 1], sizes = [4, 1], strides = [1, 1]} : vector<4x8xf32> to vector<4x1xf32>
    %47 = vector.extract_strided_slice %44 {offsets = [0, 2], sizes = [4, 1], strides = [1, 1]} : vector<4x8xf32> to vector<4x1xf32>
    %48 = vector.extract_strided_slice %44 {offsets = [0, 3], sizes = [4, 1], strides = [1, 1]} : vector<4x8xf32> to vector<4x1xf32>
    %49 = vector.extract_strided_slice %44 {offsets = [0, 4], sizes = [4, 1], strides = [1, 1]} : vector<4x8xf32> to vector<4x1xf32>
    %50 = vector.extract_strided_slice %44 {offsets = [0, 5], sizes = [4, 1], strides = [1, 1]} : vector<4x8xf32> to vector<4x1xf32>
    %51 = vector.extract_strided_slice %44 {offsets = [0, 6], sizes = [4, 1], strides = [1, 1]} : vector<4x8xf32> to vector<4x1xf32>
    %cst_25 = arith.constant -1.000000e+30 : f32
    %52 = vector.shape_cast %18 : vector<1x200xi1> to vector<1x200xi1>
    %53 = vector.broadcast %52 : vector<1x200xi1> to vector<4x200xi1>
    %54 = vector.broadcast %cst_25 : f32 to vector<4x200xf32>
    %55 = arith.select %53, %38, %54 : vector<4x200xi1>, vector<4x200xf32>
    %cst_26 = arith.constant dense<0xFF800000> : vector<4xf32>
    %56 = vector.multi_reduction <maximumf>, %55, %cst_26 [1] : vector<4x200xf32> to vector<4xf32>
    %57 = vector.shape_cast %56 : vector<4xf32> to vector<4x1xf32>
    %58 = arith.maximumf %45, %57 : vector<4x1xf32>
    %59 = vector.broadcast %58 : vector<4x1xf32> to vector<4x200xf32>
    %60 = arith.subf %38, %59 : vector<4x200xf32>
    %61 = math.exp %60 : vector<4x200xf32>
    %cst_27 = arith.constant 0.000000e+00 : f32
    %62 = vector.shape_cast %18 : vector<1x200xi1> to vector<1x200xi1>
    %63 = vector.broadcast %62 : vector<1x200xi1> to vector<4x200xi1>
    %64 = vector.broadcast %cst_27 : f32 to vector<4x200xf32>
    %65 = arith.select %63, %61, %64 : vector<4x200xi1>, vector<4x200xf32>
    %66 = arith.subf %45, %58 : vector<4x1xf32>
    %67 = math.exp %66 : vector<4x1xf32>
    %68 = arith.mulf %46, %67 : vector<4x1xf32>
    %cst_28 = arith.constant dense<0.000000e+00> : vector<4xf32>
    %69 = vector.multi_reduction <add>, %65, %cst_28 [1] : vector<4x200xf32> to vector<4xf32>
    %70 = vector.shape_cast %69 : vector<4xf32> to vector<4x1xf32>
    %71 = arith.addf %68, %70 : vector<4x1xf32>
    %cst_29 = arith.constant -1.000000e+30 : f32
    %72 = vector.shape_cast %18 : vector<1x200xi1> to vector<1x200xi1>
    %73 = vector.broadcast %72 : vector<1x200xi1> to vector<4x200xi1>
    %74 = vector.broadcast %cst_29 : f32 to vector<4x200xf32>
    %75 = arith.select %73, %39, %74 : vector<4x200xi1>, vector<4x200xf32>
    %cst_30 = arith.constant dense<0xFF800000> : vector<4xf32>
    %76 = vector.multi_reduction <maximumf>, %75, %cst_30 [1] : vector<4x200xf32> to vector<4xf32>
    %77 = vector.shape_cast %76 : vector<4xf32> to vector<4x1xf32>
    %78 = arith.maximumf %47, %77 : vector<4x1xf32>
    %79 = arith.subf %47, %78 : vector<4x1xf32>
    %80 = math.exp %79 : vector<4x1xf32>
    %81 = vector.broadcast %78 : vector<4x1xf32> to vector<4x200xf32>
    %82 = arith.subf %39, %81 : vector<4x200xf32>
    %83 = math.exp %82 : vector<4x200xf32>
    %cst_31 = arith.constant 0.000000e+00 : f32
    %84 = vector.shape_cast %18 : vector<1x200xi1> to vector<1x200xi1>
    %85 = vector.broadcast %84 : vector<1x200xi1> to vector<4x200xi1>
    %86 = vector.broadcast %cst_31 : f32 to vector<4x200xf32>
    %87 = arith.select %85, %83, %86 : vector<4x200xi1>, vector<4x200xf32>
    %88 = arith.mulf %48, %80 : vector<4x1xf32>
    %cst_32 = arith.constant dense<0.000000e+00> : vector<4xf32>
    %89 = vector.multi_reduction <add>, %87, %cst_32 [1] : vector<4x200xf32> to vector<4xf32>
    %90 = vector.shape_cast %89 : vector<4xf32> to vector<4x1xf32>
    %91 = arith.addf %88, %90 : vector<4x1xf32>
    %92 = arith.mulf %49, %80 : vector<4x1xf32>
    %93 = arith.mulf %87, %43 : vector<4x200xf32>
    %cst_33 = arith.constant dense<0.000000e+00> : vector<4xf32>
    %94 = vector.multi_reduction <add>, %93, %cst_33 [1] : vector<4x200xf32> to vector<4xf32>
    %95 = vector.shape_cast %94 : vector<4xf32> to vector<4x1xf32>
    %96 = arith.addf %92, %95 : vector<4x1xf32>
    %97 = arith.mulf %29, %43 : vector<4x200xf32>
    %cst_34 = arith.constant dense<0.000000e+00> : vector<4xf32>
    %98 = vector.multi_reduction <add>, %97, %cst_34 [1] : vector<4x200xf32> to vector<4xf32>
    %99 = vector.shape_cast %98 : vector<4xf32> to vector<4x1xf32>
    %100 = arith.addf %50, %99 : vector<4x1xf32>
    %cst_35 = arith.constant dense<0.000000e+00> : vector<4xf32>
    %101 = vector.multi_reduction <add>, %29, %cst_35 [1] : vector<4x200xf32> to vector<4xf32>
    %102 = vector.shape_cast %101 : vector<4xf32> to vector<4x1xf32>
    %103 = arith.addf %51, %102 : vector<4x1xf32>
    %cst_36 = arith.constant 0.000000e+00 : f32
    %104 = vector.broadcast %cst_36 : f32 to vector<4x1xf32>
    %105 = tpu.concatenate %58, %71, %78, %91, %96, %100, %103, %104 in 1 : vector<4x1xf32>, vector<4x1xf32>, vector<4x1xf32>, vector<4x1xf32>, vector<4x1xf32>, vector<4x1xf32>, vector<4x1xf32>, vector<4x1xf32> -> vector<4x8xf32>
    %c0_37 = arith.constant 0 : index
    %c0_38 = arith.constant 0 : index
    %106 = vector.load %arg15[%c0_37, %c0_38] : memref<4x8xf32, #tpu.memory_space<vmem>>, vector<4x8xf32>
    tpu.vector_store %arg15[%c0_37, %c0_38], %105 {strides = array<i32>} : memref<4x8xf32, #tpu.memory_space<vmem>>, vector<4x8xf32>,
    %107 = vector.extract_strided_slice %37 {offsets = [0, 0], sizes = [4, 200], strides = [1, 1]} : vector<8x200xf32> to vector<4x200xf32>
    %108 = vector.extract_strided_slice %37 {offsets = [4, 0], sizes = [4, 200], strides = [1, 1]} : vector<8x200xf32> to vector<4x200xf32>
    %cst_39 = arith.constant 0.000000e+00 : f32
    %109 = vector.shape_cast %18 : vector<1x200xi1> to vector<1x200xi1>
    %110 = vector.broadcast %109 : vector<1x200xi1> to vector<4x200xi1>
    %111 = vector.broadcast %cst_39 : f32 to vector<4x200xf32>
    %112 = arith.select %110, %107, %111 : vector<4x200xi1>, vector<4x200xf32>
    %c0_40 = arith.constant 0 : index
    %c0_41 = arith.constant 0 : index
    %113 = vector.load %arg16[%c0_40, %c0_41] : memref<4x8xf32, #tpu.memory_space<vmem>>, vector<4x8xf32>
    %114 = vector.extract_strided_slice %113 {offsets = [0, 0], sizes = [4, 1], strides = [1, 1]} : vector<4x8xf32> to vector<4x1xf32>
    %115 = vector.extract_strided_slice %113 {offsets = [0, 1], sizes = [4, 1], strides = [1, 1]} : vector<4x8xf32> to vector<4x1xf32>
    %116 = vector.extract_strided_slice %113 {offsets = [0, 2], sizes = [4, 1], strides = [1, 1]} : vector<4x8xf32> to vector<4x1xf32>
    %117 = vector.extract_strided_slice %113 {offsets = [0, 3], sizes = [4, 1], strides = [1, 1]} : vector<4x8xf32> to vector<4x1xf32>
    %118 = vector.extract_strided_slice %113 {offsets = [0, 4], sizes = [4, 1], strides = [1, 1]} : vector<4x8xf32> to vector<4x1xf32>
    %119 = vector.extract_strided_slice %113 {offsets = [0, 5], sizes = [4, 1], strides = [1, 1]} : vector<4x8xf32> to vector<4x1xf32>
    %120 = vector.extract_strided_slice %113 {offsets = [0, 6], sizes = [4, 1], strides = [1, 1]} : vector<4x8xf32> to vector<4x1xf32>
    %cst_42 = arith.constant -1.000000e+30 : f32
    %121 = vector.shape_cast %18 : vector<1x200xi1> to vector<1x200xi1>
    %122 = vector.broadcast %121 : vector<1x200xi1> to vector<4x200xi1>
    %123 = vector.broadcast %cst_42 : f32 to vector<4x200xf32>
    %124 = arith.select %122, %107, %123 : vector<4x200xi1>, vector<4x200xf32>
    %cst_43 = arith.constant dense<0xFF800000> : vector<4xf32>
    %125 = vector.multi_reduction <maximumf>, %124, %cst_43 [1] : vector<4x200xf32> to vector<4xf32>
    %126 = vector.shape_cast %125 : vector<4xf32> to vector<4x1xf32>
    %127 = arith.maximumf %114, %126 : vector<4x1xf32>
    %128 = vector.broadcast %127 : vector<4x1xf32> to vector<4x200xf32>
    %129 = arith.subf %107, %128 : vector<4x200xf32>
    %130 = math.exp %129 : vector<4x200xf32>
    %cst_44 = arith.constant 0.000000e+00 : f32
    %131 = vector.shape_cast %18 : vector<1x200xi1> to vector<1x200xi1>
    %132 = vector.broadcast %131 : vector<1x200xi1> to vector<4x200xi1>
    %133 = vector.broadcast %cst_44 : f32 to vector<4x200xf32>
    %134 = arith.select %132, %130, %133 : vector<4x200xi1>, vector<4x200xf32>
    %135 = arith.subf %114, %127 : vector<4x1xf32>
    %136 = math.exp %135 : vector<4x1xf32>
    %137 = arith.mulf %115, %136 : vector<4x1xf32>
    %cst_45 = arith.constant dense<0.000000e+00> : vector<4xf32>
    %138 = vector.multi_reduction <add>, %134, %cst_45 [1] : vector<4x200xf32> to vector<4xf32>
    %139 = vector.shape_cast %138 : vector<4xf32> to vector<4x1xf32>
    %140 = arith.addf %137, %139 : vector<4x1xf32>
    %cst_46 = arith.constant -1.000000e+30 : f32
    %141 = vector.shape_cast %18 : vector<1x200xi1> to vector<1x200xi1>
    %142 = vector.broadcast %141 : vector<1x200xi1> to vector<4x200xi1>
    %143 = vector.broadcast %cst_46 : f32 to vector<4x200xf32>
    %144 = arith.select %142, %108, %143 : vector<4x200xi1>, vector<4x200xf32>
    %cst_47 = arith.constant dense<0xFF800000> : vector<4xf32>
    %145 = vector.multi_reduction <maximumf>, %144, %cst_47 [1] : vector<4x200xf32> to vector<4xf32>
    %146 = vector.shape_cast %145 : vector<4xf32> to vector<4x1xf32>
    %147 = arith.maximumf %116, %146 : vector<4x1xf32>
    %148 = arith.subf %116, %147 : vector<4x1xf32>
    %149 = math.exp %148 : vector<4x1xf32>
    %150 = vector.broadcast %147 : vector<4x1xf32> to vector<4x200xf32>
    %151 = arith.subf %108, %150 : vector<4x200xf32>
    %152 = math.exp %151 : vector<4x200xf32>
    %cst_48 = arith.constant 0.000000e+00 : f32
    %153 = vector.shape_cast %18 : vector<1x200xi1> to vector<1x200xi1>
    %154 = vector.broadcast %153 : vector<1x200xi1> to vector<4x200xi1>
    %155 = vector.broadcast %cst_48 : f32 to vector<4x200xf32>
    %156 = arith.select %154, %152, %155 : vector<4x200xi1>, vector<4x200xf32>
    %157 = arith.mulf %117, %149 : vector<4x1xf32>
    %cst_49 = arith.constant dense<0.000000e+00> : vector<4xf32>
    %158 = vector.multi_reduction <add>, %156, %cst_49 [1] : vector<4x200xf32> to vector<4xf32>
    %159 = vector.shape_cast %158 : vector<4xf32> to vector<4x1xf32>
    %160 = arith.addf %157, %159 : vector<4x1xf32>
    %161 = arith.mulf %118, %149 : vector<4x1xf32>
    %162 = arith.mulf %156, %112 : vector<4x200xf32>
    %cst_50 = arith.constant dense<0.000000e+00> : vector<4xf32>
    %163 = vector.multi_reduction <add>, %162, %cst_50 [1] : vector<4x200xf32> to vector<4xf32>
    %164 = vector.shape_cast %163 : vector<4xf32> to vector<4x1xf32>
    %165 = arith.addf %161, %164 : vector<4x1xf32>
    %166 = arith.mulf %29, %112 : vector<4x200xf32>
    %cst_51 = arith.constant dense<0.000000e+00> : vector<4xf32>
    %167 = vector.multi_reduction <add>, %166, %cst_51 [1] : vector<4x200xf32> to vector<4xf32>
    %168 = vector.shape_cast %167 : vector<4xf32> to vector<4x1xf32>
    %169 = arith.addf %119, %168 : vector<4x1xf32>
    %cst_52 = arith.constant dense<0.000000e+00> : vector<4xf32>
    %170 = vector.multi_reduction <add>, %29, %cst_52 [1] : vector<4x200xf32> to vector<4xf32>
    %171 = vector.shape_cast %170 : vector<4xf32> to vector<4x1xf32>
    %172 = arith.addf %120, %171 : vector<4x1xf32>
    %cst_53 = arith.constant 0.000000e+00 : f32
    %173 = vector.broadcast %cst_53 : f32 to vector<4x1xf32>
    %174 = tpu.concatenate %127, %140, %147, %160, %165, %169, %172, %173 in 1 : vector<4x1xf32>, vector<4x1xf32>, vector<4x1xf32>, vector<4x1xf32>, vector<4x1xf32>, vector<4x1xf32>, vector<4x1xf32>, vector<4x1xf32> -> vector<4x8xf32>
    %c0_54 = arith.constant 0 : index
    %c0_55 = arith.constant 0 : index
    %175 = vector.load %arg16[%c0_54, %c0_55] : memref<4x8xf32, #tpu.memory_space<vmem>>, vector<4x8xf32>
    tpu.vector_store %arg16[%c0_54, %c0_55], %174 {strides = array<i32>} : memref<4x8xf32, #tpu.memory_space<vmem>>, vector<4x8xf32>,
    %c0_i32_56 = arith.constant 0 : i32
    %176 = arith.cmpi eq, %arg1, %c0_i32_56 : i32
    %177 = arith.extui %176 : i1 to i32
    %c0_i32_57 = arith.constant 0 : i32
    %178 = arith.cmpi ne, %177, %c0_i32_57 : i32
    scf.if %178 {
      %c0_58 = arith.constant 0 : index
      %c0_59 = arith.constant 0 : index
      %179 = memref.load %arg13[%c0_58, %c0_59] : memref<1x2xf32, #tpu.memory_space<smem>>
      %c0_60 = arith.constant 0 : index
      %c0_61 = arith.constant 0 : index
      %180 = vector.load %arg15[%c0_60, %c0_61] : memref<4x8xf32, #tpu.memory_space<vmem>>, vector<4x8xf32>
      %181 = vector.extract_strided_slice %180 {offsets = [0, 0], sizes = [4, 1], strides = [1, 1]} : vector<4x8xf32> to vector<4x1xf32>
      %182 = vector.extract_strided_slice %180 {offsets = [0, 1], sizes = [4, 1], strides = [1, 1]} : vector<4x8xf32> to vector<4x1xf32>
      %183 = math.log %182 : vector<4x1xf32>
      %184 = arith.addf %181, %183 : vector<4x1xf32>
      %185 = vector.extract_strided_slice %180 {offsets = [0, 4], sizes = [4, 1], strides = [1, 1]} : vector<4x8xf32> to vector<4x1xf32>
      %186 = vector.extract_strided_slice %180 {offsets = [0, 3], sizes = [4, 1], strides = [1, 1]} : vector<4x8xf32> to vector<4x1xf32>
      %187 = arith.divf %185, %186 : vector<4x1xf32>
      %188 = vector.extract_strided_slice %180 {offsets = [0, 5], sizes = [4, 1], strides = [1, 1]} : vector<4x8xf32> to vector<4x1xf32>
      %189 = vector.extract_strided_slice %180 {offsets = [0, 6], sizes = [4, 1], strides = [1, 1]} : vector<4x8xf32> to vector<4x1xf32>
      %cst_62 = arith.constant 1.000000e-30 : f32
      %190 = vector.broadcast %cst_62 : f32 to vector<4x1xf32>
      %191 = arith.maximumf %189, %190 : vector<4x1xf32>
      %192 = arith.divf %188, %191 : vector<4x1xf32>
      %193 = vector.broadcast %179 : f32 to vector<4x1xf32>
      %194 = arith.mulf %193, %187 : vector<4x1xf32>
      %cst_63 = arith.constant 1.000000e+00 : f32
      %195 = arith.subf %cst_63, %179 : f32
      %196 = vector.broadcast %195 : f32 to vector<4x1xf32>
      %197 = arith.mulf %196, %192 : vector<4x1xf32>
      %198 = arith.addf %194, %197 : vector<4x1xf32>
      %199 = arith.subf %184, %198 : vector<4x1xf32>
      %c0_64 = arith.constant 0 : index
      %c0_65 = arith.constant 0 : index
      %200 = vector.load %arg16[%c0_64, %c0_65] : memref<4x8xf32, #tpu.memory_space<vmem>>, vector<4x8xf32>
      %201 = vector.extract_strided_slice %200 {offsets = [0, 0], sizes = [4, 1], strides = [1, 1]} : vector<4x8xf32> to vector<4x1xf32>
      %202 = vector.extract_strided_slice %200 {offsets = [0, 1], sizes = [4, 1], strides = [1, 1]} : vector<4x8xf32> to vector<4x1xf32>
      %203 = math.log %202 : vector<4x1xf32>
      %204 = arith.addf %201, %203 : vector<4x1xf32>
      %205 = vector.extract_strided_slice %200 {offsets = [0, 4], sizes = [4, 1], strides = [1, 1]} : vector<4x8xf32> to vector<4x1xf32>
      %206 = vector.extract_strided_slice %200 {offsets = [0, 3], sizes = [4, 1], strides = [1, 1]} : vector<4x8xf32> to vector<4x1xf32>
      %207 = arith.divf %205, %206 : vector<4x1xf32>
      %208 = vector.extract_strided_slice %200 {offsets = [0, 5], sizes = [4, 1], strides = [1, 1]} : vector<4x8xf32> to vector<4x1xf32>
      %209 = vector.extract_strided_slice %200 {offsets = [0, 6], sizes = [4, 1], strides = [1, 1]} : vector<4x8xf32> to vector<4x1xf32>
      %cst_66 = arith.constant 1.000000e-30 : f32
      %210 = vector.broadcast %cst_66 : f32 to vector<4x1xf32>
      %211 = arith.maximumf %209, %210 : vector<4x1xf32>
      %212 = arith.divf %208, %211 : vector<4x1xf32>
      %213 = vector.broadcast %179 : f32 to vector<4x1xf32>
      %214 = arith.mulf %213, %207 : vector<4x1xf32>
      %cst_67 = arith.constant 1.000000e+00 : f32
      %215 = arith.subf %cst_67, %179 : f32
      %216 = vector.broadcast %215 : f32 to vector<4x1xf32>
      %217 = arith.mulf %216, %212 : vector<4x1xf32>
      %218 = arith.addf %214, %217 : vector<4x1xf32>
      %219 = arith.subf %204, %218 : vector<4x1xf32>
      %220 = arith.addf %199, %219 : vector<4x1xf32>
      %cst_68 = arith.constant 5.000000e-01 : f32
      %221 = vector.broadcast %cst_68 : f32 to vector<4x1xf32>
      %222 = arith.mulf %221, %220 : vector<4x1xf32>
      %c0_69 = arith.constant 0 : index
      %c0_70 = arith.constant 0 : index
      %223 = vector.load %arg14[%c0_69, %c0_70] : memref<4x1xf32, #tpu.memory_space<vmem>>, vector<4x1xf32>
      tpu.vector_store %arg14[%c0_69, %c0_70], %222 {strides = array<i32>} : memref<4x1xf32, #tpu.memory_space<vmem>>, vector<4x1xf32>,
    } else {
    }
    return
  }
  func.func @transform_0(%arg0: i32, %arg1: i32) -> (i32, i32) {
    %c0_i32 = arith.constant 0 : i32
    %c0_i32_0 = arith.constant 0 : i32
    return %arg0, %c0_i32 : i32, i32
  }
  func.func @transform_1(%arg0: i32, %arg1: i32) -> (i32, i32) {
    %c0_i32 = arith.constant 0 : i32
    %c0_i32_0 = arith.constant 0 : i32
    return %arg0, %c0_i32 : i32, i32
  }
  func.func @transform_2(%arg0: i32, %arg1: i32) -> (i32, i32) {
    %c0_i32 = arith.constant 0 : i32
    %c0_i32_0 = arith.constant 0 : i32
    return %arg0, %c0_i32 : i32, i32
  }
  func.func @transform_3(%arg0: i32, %arg1: i32) -> (i32, i32) {
    %c0_i32 = arith.constant 0 : i32
    %c0_i32_0 = arith.constant 0 : i32
    return %arg0, %c0_i32 : i32, i32
  }
  func.func @transform_4(%arg0: i32, %arg1: i32) -> (i32, i32) {
    %c0_i32 = arith.constant 0 : i32
    %c0_i32_0 = arith.constant 0 : i32
    %c0_i32_1 = arith.constant 0 : i32
    return %c0_i32, %c0_i32_0 : i32, i32
  }
  func.func @transform_5(%arg0: i32, %arg1: i32) -> (i32, i32) {
    %c0_i32 = arith.constant 0 : i32
    %c0_i32_0 = arith.constant 0 : i32
    %c0_i32_1 = arith.constant 0 : i32
    return %c0_i32, %c0_i32_0 : i32, i32
  }
  func.func @transform_6(%arg0: i32, %arg1: i32) -> (i32, i32) {
    %c0_i32 = arith.constant 0 : i32
    %c0_i32_0 = arith.constant 0 : i32
    return %c0_i32, %arg1 : i32, i32
  }
  func.func @transform_7(%arg0: i32, %arg1: i32) -> (i32, i32) {
    %c0_i32 = arith.constant 0 : i32
    %c0_i32_0 = arith.constant 0 : i32
    return %c0_i32, %arg1 : i32, i32
  }
  func.func @transform_8(%arg0: i32, %arg1: i32) -> (i32, i32) {
    %c0_i32 = arith.constant 0 : i32
    %c0_i32_0 = arith.constant 0 : i32
    return %arg0, %c0_i32 : i32, i32
  }
  func.func @transform_9(%arg0: i32, %arg1: i32) -> (i32, i32) {
    %c0_i32 = arith.constant 0 : i32
    %c0_i32_0 = arith.constant 0 : i32
    %c0_i32_1 = arith.constant 0 : i32
    return %c0_i32, %c0_i32_0 : i32, i32
  }
  func.func @transform_10(%arg0: i32, %arg1: i32) -> (i32, i32) {
    %c0_i32 = arith.constant 0 : i32
    %c0_i32_0 = arith.constant 0 : i32
    return %c0_i32, %arg1 : i32, i32
  }
  func.func @transform_11(%arg0: i32, %arg1: i32) -> (i32, i32) {
    %c0_i32 = arith.constant 0 : i32
    %c0_i32_0 = arith.constant 0 : i32
    %c0_i32_1 = arith.constant 0 : i32
    return %c0_i32, %c0_i32_0 : i32, i32
  }
  func.func @transform_12(%arg0: i32, %arg1: i32) -> (i32, i32) {
    %c0_i32 = arith.constant 0 : i32
    %c0_i32_0 = arith.constant 0 : i32
    return %arg0, %c0_i32 : i32, i32
  }
}

</mosaic_0001>

<bundles_post_ra>
// kernel: vtc_forward.4
= control target key start
LH: loop header
LB: loop body
LE: loop exit
PB: predicated region body
PF: predicated region fallthrough
CT: control target
= control target key end

     0   :  { %v45_v1 = vlaneseq  ;;  %v477_v2 = vmov 0.0   ;;  %vm478_vm0 = vmmov 0   ;;  %s599_s0 = inlined_call_operand.vmem [shape: f32[4,16,32], index: 0, kind: input, shape index: {}]   ;;  %s600_s1 = inlined_call_operand.vmem [shape: bf16[32,32], index: 1, kind: input, shape index: {}]   ;;  %s601_s2 = inlined_call_operand.vmem [shape: f32[1,32], index: 2, kind: input, shape index: {}]   ;;  %s602_s3 = inlined_call_operand.vmem [shape: f32[4,16], index: 3, kind: input, shape index: {}]   ;;  %s603_s4 = inlined_call_operand.hbm [shape: f32[4,16,32], index: 4, kind: output, shape index: {0}]   ;;  %s604_s5 = inlined_call_operand.vmem [shape: f32[4,32], index: 5, kind: output, shape index: {1}]  }
   0x1   :  { %v451_v0 = vld [vmem:[%s600_s1] sm:$0xff]   ;;  %414 = vmatprep.subr.bf16.mxu0 %v477_v2  ;;  %422 = vmatprep.subr.bf16.mxu1 %v477_v2  ;;  %v452_v3 = vld [vmem:[%s600_s1 + $0x8] sm:$0xff]   ;;  %v23_v6 = vld [vmem:[%s599_s0 + $0x10] sm:$0xff] }
   0x2   :  { %415 = vmatpush3.bf16.msra.mxu0 %v451_v0  ;;  %423 = vmatpush3.bf16.msra.mxu1 %v451_v0  ;;  %v21_v4 = vld [vmem:[%s599_s0] sm:$0xff]  ;;  %v524_v5 = vld [vmem:[%s599_s0 + $0x8] sm:$0xff]  ;;  %v46_v7 = vshrl.u32 %v45_v1, 7  ;;  %v24_v8 = vld [vmem:[%s599_s0 + $0x18] sm:$0xff] }
   0x3   :  { %416 = vmatprep.subr.bf16.mxu0 %v477_v2  ;;  %424 = vmatprep.subr.bf16.mxu1 %v477_v2  ;;  %v44_v9 = vld [vmem:[%s602_s3] sm:$0xf]  ;;  %v161_v12 = vpack.c.bf16 %v524_v5, %v21_v4  ;;  %v162_v13 = vpack.c.bf16 %v24_v8, %v23_v6 }
   0x4   :  { %418 = vmatprep.mubr.msk.bf16.mxu0 %vm478_vm0, %v477_v2  ;;  %426 = vmatprep.mubr.msk.bf16.mxu1 %vm478_vm0, %v477_v2  ;;  %v58_v10 = vsub.s32 1, %v46_v7  ;;  %v47_v11 = vsub.s32 0, %v46_v7 }
   0x5   :  { %11 = vsyncpa [#allocation3], 0  ;;  %vm110_vm1 = vcmask 261120   ;;  %v25_v16 = vld [vmem:[%s599_s0 + $0x20] sm:$0xff]  ;;  %v26_v17 = vld [vmem:[%s599_s0 + $0x28] sm:$0xff]  ;;  %v69_v20 = vsub.s32 2, %v46_v7 }
   0x6   :  { %417 = vmatpush3.bf16.msra.mxu0 %v452_v3  ;;  %425 = vmatpush3.bf16.msra.mxu1 %v452_v3  ;;  %v59_v14 = vrot.slane %v44_v9, %v58_v10  ;;  %v48_v15 = vrot.slane %v44_v9, %v47_v11  ;;  %v27_v18 = vld [vmem:[%s599_s0 + $0x30] sm:$0xff]  ;;  %v28_v19 = vld [vmem:[%s599_s0 + $0x38] sm:$0xff]  ;;  %v163_v21 = vpack.c.bf16 %v26_v17, %v25_v16  ;;  %v80_v24 = vsub.s32 3, %v46_v7 }
   0x7   :  { %430 = vmatprep.subr.bf16.mxu0 %v477_v2  ;;  %438 = vmatprep.subr.bf16.mxu1 %v477_v2  ;;  %v164_v22 = vpack.c.bf16 %v28_v19, %v27_v18  ;;  %v70_v23 = vrot.slane %v44_v9, %v69_v20  ;;  %vm33_vm2 = vcmask 257024   ;;  %vm151_vm3 = vcmask 1041409  }
   0x8   :  { %61 = vbcast.lane.b32.xlu1 %v59_v14, 256  ;;  %50 = vbcast.lane.b32.xlu0 %v48_v15, 256  ;;  %v81_v25 = vrot.slane %v44_v9, %v80_v24  ;;  %34 = vst.msk [vmem:[%s604_s5] sm:$0xf] %vm33_vm2, %v477_v2  ;;  %vm153_vm4 = vcmask 1042434   ;;  %vm155_vm5 = vcmask 1043459  }
   0x9   :  { %419 = vmatmul.mubr.msk.bf16.vlgmr.msra.gmra.mrb[0].mxu0 %vm110_vm1, %v161_v12  ;;  %427 = vmatmul.mubr.msk.bf16.vlgmr.msra.gmra.mrb[0].mxu1 %vm110_vm1, %v162_v13 }
   0xa   :  { %431 = vmatpush3.bf16.msra.mxu0 %v451_v0  ;;  %439 = vmatpush3.bf16.msra.mxu1 %v451_v0 }
   0xb   :  { %432 = vmatprep.subr.bf16.mxu0 %v477_v2  ;;  %440 = vmatprep.subr.bf16.mxu1 %v477_v2 }
   0xc   :  { %434 = vmatprep.mubr.msk.bf16.mxu0 %vm478_vm0, %v477_v2  ;;  %442 = vmatprep.mubr.msk.bf16.mxu1 %vm478_vm0, %v477_v2 }
   0xd   :  { %65 = vbcast.lane.b32.xlu1 %v59_v14, 264  ;;  %54 = vbcast.lane.b32.xlu0 %v48_v15, 264 }
   0xe   :  { %433 = vmatpush3.bf16.msra.mxu0 %v452_v3  ;;  %441 = vmatpush3.bf16.msra.mxu1 %v452_v3 }
   0xf   :  { %v109_v15 = vld [vmem:[%s604_s5] sm:$0xf] }
  0x11   :  { %435 = vmatmul.mubr.msk.bf16.vlgmr.msra.gmra.mrb[4].mxu0 %vm110_vm1, %v163_v21  ;;  %443 = vmatmul.mubr.msk.bf16.vlgmr.msra.gmra.mrb[4].mxu1 %vm110_vm1, %v164_v22 }
  0x12   :  { %76 = vbcast.lane.b32.xlu1 %v70_v23, 264  ;;  %72 = vbcast.lane.b32.xlu0 %v70_v23, 256 }
  0x16   :  { %87 = vbcast.lane.b32.xlu1 %v81_v25, 264  ;;  %83 = vbcast.lane.b32.xlu0 %v81_v25, 256 }
  0x7a   :  { %v62_v26 = vpop.permute.xlu1 %61  ;;  %v51_v27 = vpop.permute.xlu0 %50 }
  0x7b   :  { %v91_v28 = vmul.f32 %v62_v26, %v23_v6  ;;  %v89_v29 = vmul.f32 %v51_v27, %v21_v4 }
  0x7d   :  { %v120_v32 = vsel %vm110_vm1, %v91_v28, 0.0  ;;  %v111_v33 = vsel %vm110_vm1, %v89_v29, 0.0 }
  0x7f   :  { %v66_v30 = vpop.permute.xlu1 %65  ;;  %v55_v31 = vpop.permute.xlu0 %54 }
  0x80   :  { %v92_v34 = vmul.f32 %v66_v30, %v24_v8  ;;  %v90_v35 = vmul.f32 %v55_v31, %v524_v5 }
  0x82   :  { %v121_v36 = vsel %vm110_vm1, %v92_v34, 0.0  ;;  %v112_v37 = vsel %vm110_vm1, %v90_v35, 0.0 }
  0x83   :  { %v122_v38 = vadd.f32 %v121_v36, %v120_v32  ;;  %v113_v39 = vadd.f32 %v112_v37, %v111_v33 }
  0x84   :  { %v77_v40 = vpop.permute.xlu1 %76  ;;  %v73_v41 = vpop.permute.xlu0 %72 }
  0x85   :  { %v123_v42 = vrot.slane %v122_v38, 4  ;;  %v114_v43 = vrot.slane %v113_v39, 4  ;;  %v94_v44 = vmul.f32 %v77_v40, %v26_v17  ;;  %v93_v45 = vmul.f32 %v73_v41, %v25_v16 }
  0x87   :  { %v124_v46 = vadd.f32 %v123_v42, %v122_v38  ;;  %v115_v47 = vadd.f32 %v114_v43, %v113_v39  ;;  %v130_v48 = vsel %vm110_vm1, %v94_v44, 0.0  ;;  %v129_v49 = vsel %vm110_vm1, %v93_v45, 0.0 }
  0x88   :  { %v131_v50 = vadd.f32 %v130_v48, %v129_v49  ;;  %v88_v51 = vpop.permute.xlu1 %87  ;;  %v84_v52 = vpop.permute.xlu0 %83 }
  0x89   :  { %v125_v53 = vrot.slane %v124_v46, 2  ;;  %v116_v54 = vrot.slane %v115_v47, 2  ;;  %v96_v55 = vmul.f32 %v88_v51, %v28_v19  ;;  %v95_v56 = vmul.f32 %v84_v52, %v27_v18  ;;  %v395_v19 = vld [vmem:[%s601_s2] ss:$0 sm:$0xff]  ;;  %s479_s2 = smov [#allocation2]  }
  0x8a   :  { %v132_v57 = vrot.slane %v131_v50, 4 }
  0x8b   :  { %v126_v58 = vadd.f32 %v125_v53, %v124_v46  ;;  %v117_v59 = vadd.f32 %v116_v54, %v115_v47  ;;  %v139_v60 = vsel %vm110_vm1, %v96_v55, 0.0  ;;  %v138_v61 = vsel %vm110_vm1, %v95_v56, 0.0 }
  0x8c   :  { %v133_v62 = vadd.f32 %v132_v57, %v131_v50  ;;  %v140_v63 = vadd.f32 %v139_v60, %v138_v61 }
  0x8d   :  { %v127_v0 = vrot.slane %v126_v58, 1  ;;  %v118_v1 = vrot.slane %v117_v59, 1 }
  0x8e   :  { %v134_v2 = vrot.slane %v133_v62, 2  ;;  %v141_v3 = vrot.slane %v140_v63, 4 }
  0x8f   :  { %v128_v4 = vadd.f32 %v127_v0, %v126_v58  ;;  %v119_v5 = vadd.f32 %v118_v1, %v117_v59 }
  0x90   :  { %v135_v6 = vadd.f32 %v134_v2, %v133_v62  ;;  %v142_v7 = vadd.f32 %v141_v3, %v140_v63 }
  0x91   :  { %v152_v10 = vsel %vm151_vm3, %v128_v4, %v119_v5 }
  0x92   :  { %v136_v8 = vrot.slane %v135_v6, 1  ;;  %v143_v9 = vrot.slane %v142_v7, 2 }
  0x94   :  { %v137_v11 = vadd.f32 %v136_v8, %v135_v6  ;;  %v144_v12 = vadd.f32 %v143_v9, %v142_v7 }
  0x96   :  { %v145_v13 = vrot.slane %v144_v12, 1  ;;  %v154_v14 = vsel %vm153_vm4, %v137_v11, %v152_v10 }
  0x98   :  { %v146_v16 = vadd.f32 %v145_v13, %v144_v12 }
  0x9a   :  { %v156_v17 = vsel %vm155_vm5, %v146_v16, %v154_v14 }
  0x9b   :  { %v158_v18 = vadd.f32 %v156_v17, %v109_v15 }
  0x9d   :  { %160 = vst.msk [vmem:[%s604_s5] sm:$0xf] %vm33_vm2, %v158_v18  ;;  %s380_s5 = sshll.u32 %s479_s2, 4  ;;  %s381_s5 = int_to_ptr.vmem [resolvable:$true] %s380_s5 }
  0x9e   :  { %s453_s20 = scalar_lea.vmem %s381_s5, 1024  ;;  %p458_p1 = scmp.lt.s32.totalorder %s381_s5, %s381_s5 }
  0x9f   :  { %p454_p0 = scmp.ne.s32.totalorder %s381_s5, %s453_s20  ;;  %p459_p2 = scmp.lt.s32.totalorder %s453_s20, %s453_s20 }
  0xa1   :  { %p460_p3 = por %p459_p2, %p458_p1 }
  0xa3   :  { %p461_p4 = pnand %p460_p3, %p454_p0 }
  0xdc   :  { %v225_v20 = vpop.f32.mrb[0].mxu0  ;;  %v271_v21 = vpop.f32.mrb[0].mxu1 }
  0xdd   :  { %v226_v22 = vadd.f32 %v395_v19, %v225_v20  ;;  %v272_v23 = vadd.f32 %v395_v19, %v271_v21  ;;  %v420_v24 = vpop.f32.mrb[1].mxu0  ;;  %v428_v25 = vpop.f32.mrb[1].mxu1 }
  0xde   :  { %v228_v26 = vpop.f32.mrb[2].mxu0  ;;  %v274_v27 = vpop.f32.mrb[2].mxu1 }
  0xdf   :  { %232 = vst.msk [vmem:[#allocation2] sm:$0xff] %vm110_vm1, %v226_v22  ;;  %279 = vst.msk [vmem:[#allocation2 + $0x10] sm:$0xff] %vm110_vm1, %v272_v23  ;;  %v229_v28 = vadd.f32 %v395_v19, %v228_v26  ;;  %v275_v29 = vadd.f32 %v395_v19, %v274_v27  ;;  %v421_v30 = vpop.f32.mrb[3].mxu0  ;;  %v429_v31 = vpop.f32.mrb[3].mxu1 }
  0xe1   :  { %233 = vst.msk [vmem:[#allocation2 + $0x8] sm:$0xff] %vm110_vm1, %v229_v28  ;;  %280 = vst.msk [vmem:[#allocation2 + $0x18] sm:$0xff] %vm110_vm1, %v275_v29 }
  0xe4   :  { %v318_v32 = vpop.f32.mrb[4].mxu0  ;;  %v365_v33 = vpop.f32.mrb[4].mxu1 }
  0xe5   :  { %v319_v34 = vadd.f32 %v395_v19, %v318_v32  ;;  %v366_v35 = vadd.f32 %v395_v19, %v365_v33  ;;  %v436_v36 = vpop.f32.mrb[5].mxu0  ;;  %v444_v37 = vpop.f32.mrb[5].mxu1 }
  0xe6   :  { %v321_v38 = vpop.f32.mrb[6].mxu0  ;;  %v368_v39 = vpop.f32.mrb[6].mxu1 }
  0xe7   :  { %326 = vst.msk [vmem:[#allocation2 + $0x20] sm:$0xff] %vm110_vm1, %v319_v34  ;;  %373 = vst.msk [vmem:[#allocation2 + $0x30] sm:$0xff] %vm110_vm1, %v366_v35  ;;  %v322_v40 = vadd.f32 %v395_v19, %v321_v38  ;;  %v369_v41 = vadd.f32 %v395_v19, %v368_v39  ;;  %v437_v42 = vpop.f32.mrb[7].mxu0  ;;  %v445_v43 = vpop.f32.mrb[7].mxu1 }
  0xe9   :  { %327 = vst.msk [vmem:[#allocation2 + $0x28] sm:$0xff] %vm110_vm1, %v322_v40  ;;  %374 = vst.msk [vmem:[#allocation2 + $0x38] sm:$0xff] %vm110_vm1, %v369_v41 }
  0xea   :  { %464 = shalt.err (!%p461_p4)
}
  0xeb   :  { %s465_s23 = scalar_lea.hbm %s603_s4, 1024 }
  0xec   :  { %p466_p5 = scmp.ne.s32.totalorder %s603_s4, %s465_s23  ;;  %p469_p6 = scmp.lt.u32.totalorder %s465_s23, %s603_s4 }
  0xee   :  { %p471_p7 = pnand %p469_p6, %p466_p5 }
  0xf0   :  { %474 = shalt.err (!%p471_p7)
}
  0xf1   :  { %s480_s28 = smov 128   ;;  %s481_s1 = smov 8  }
  0xf2   :  { %386 = dma.vmem_to_hbm [thread:$0]  %s381_s5, 1024, %s603_s4, [#allocation3], %s480_s28, %s480_s28, %s481_s1  }
  0xf3   :  { %475 = dma.done.wait [#allocation3], 1024  }
  0xf4   :  { %476 = vsyncadd [#allocation3], 4294966272 }
  0xf5   :  { %394 = vsyncpa [#allocation3], 1 }

// kernel: vtc_forward.6
= control target key start
LH: loop header
LB: loop body
LE: loop exit
PB: predicated region body
PF: predicated region fallthrough
CT: control target
= control target key end

     0   :  { %s751_s21 = smov 0   ;;  %s794_s0 = inlined_call_operand.vmem [shape: f32[4,4,32], index: 0, kind: input, shape index: {}]   ;;  %s795_s1 = inlined_call_operand.vmem [shape: f32[4,4,1], index: 1, kind: input, shape index: {}]   ;;  %s796_s2 = inlined_call_operand.vmem [shape: f32[4,32,32], index: 2, kind: input, shape index: {}]   ;;  %s797_s3 = inlined_call_operand.vmem [shape: f32[4,1,32], index: 3, kind: input, shape index: {}]   ;;  %s798_s4 = inlined_call_operand.vmem [shape: f32[4,32,32], index: 4, kind: input, shape index: {}]   ;;  %s799_s5 = inlined_call_operand.vmem [shape: f32[4,1,32], index: 5, kind: input, shape index: {}]   ;;  %s800_s6 = inlined_call_operand.vmem [shape: f32[4,4,32], index: 6, kind: output, shape index: {}]  }
   0x1 LB: > { %s625_s22 = sadd.s32 4294967295, %s710_s21   ;;  %p629_p0 = scmp.ge.s32.totalorder %s710_s21, 1  ;;  %s710_s21 = sphi %s751_s21, %s16_s21  }
   0x2   : > { %p256_p1 = scmp.lt.s32.totalorder %s710_s21, 5 }
   0x4   : > { %p257_p2 = pnand %p629_p0, %p256_p1 }
   0x5   : > { %p304_p3 = scmp.lt.s32.totalorder (!%p257_p2), %s625_s22, 3  ;;  %v712_v0 = vmov (!%p257_p2), 0.0|0.0   ;;  %vm713_vm0 = vmmov (!%p257_p2), 0   ;;  %v714_v1 = vmov (!%p257_p2), 0.0   ;;  %v715_v2 = vmov (!%p257_p2), 0  }
   0x6   : > { %260 = sbr.rel (%p257_p2) target bundleno = 615 (0x267), region = 44  ;;  %677 = vmatprep.subr.bf16.mxu0 (!%p257_p2), %v712_v0  ;;  %663 = vmatprep.mubr.msk.f32.mxu0 (!%p257_p2), %vm713_vm0, %v714_v1  ;;  %vm351_vm1 = vcmask (!%p257_p2), 261120   ;;  %vm510_vm2 = vcmask (!%p257_p2), 257024  }
   0x7   : > { %701 = vset.pattern.permute.xlu0 (!%p257_p2), %v715_v2  ;;  %683 = vmatprep.subr.bf16.mxu1 (!%p257_p2), %v712_v0 }
   0x8   : > { %674 = vmatprep.mubr.msk.f32.mxu1 (!%p257_p2), %vm713_vm0, %v714_v1 }
   0xd   : > { %s802_s22 = smov (!%p304_p3, %s625_s22), 3 }
   0xe   : > { %s643_s23 = sshll.u32 %s802_s22, 5  ;;  %s766_s27 = sshll.u32 %s802_s22, 2 }
   0xf   : > { %s316_s26 = scalar_lea.vmem %s796_s2, %s643_s23  ;;  %s311_s30 = scalar_lea.vmem %s795_s1, %s766_s27 }
  0x10   : > { %v333_v3 = vld [vmem:[%s316_s26] sm:$0xff]  ;;  %v334_v4 = vld [vmem:[%s316_s26 + $0x8] sm:$0xff]  ;;  %v335_v5 = vld [vmem:[%s316_s26 + $0x10] sm:$0xff]  ;;  %s324_s9 = scalar_lea.vmem %s798_s4, %s643_s23  ;;  %s307_s12 = scalar_lea.vmem %s794_s0, %s766_s27 }
  0x11   : > { %v678_v6 = vpack.c.bf16 %v334_v4, %v333_v3  ;;  %v336_v7 = vld [vmem:[%s316_s26 + $0x18] sm:$0xff]  ;;  %v337_v8 = vld [vmem:[%s311_s30] sm:$0xf]  ;;  %v426_v10 = vld [vmem:[%s324_s9 + $0x8] sm:$0xff]  ;;  %s319_s15 = scalar_lea.vmem %s797_s3, %s802_s22  ;;  %s327_s18 = scalar_lea.vmem %s799_s5, %s802_s22 }
  0x12   : > { %341 = vperm.xlu0 %701, %v337_v8   ;;  %v425_v9 = vld [vmem:[%s324_s9] sm:$0xff]  ;;  %v681_v11 = vpack.c.bf16 %v336_v7, %v335_v5  ;;  %v427_v14 = vld [vmem:[%s324_s9 + $0x10] sm:$0xff]  ;;  %v428_v15 = vld [vmem:[%s324_s9 + $0x18] sm:$0xff]  ;;  %s331_s23 = scalar_lea.vmem %s800_s6, %s766_s27 }
  0x13   : > { %679 = vmatpush3.bf16.msra.mxu0 %v678_v6  ;;  %v684_v12 = vpack.c.bf16 %v426_v10, %v425_v9  ;;  %v332_v13 = vld [vmem:[%s307_s12] sm:$0xf]  ;;  %v687_v16 = vpack.c.bf16 %v428_v15, %v427_v14 }
  0x14   : > { %680 = vmatprep.subr.bf16.mxu0 %v712_v0  ;;  %v637_v17 = vld [vmem:[%s319_s15] ss:$0 sm:$0xff] }
  0x15   : > { %685 = vmatpush3.bf16.msra.mxu1 %v684_v12  ;;  %v639_v23 = vld [vmem:[%s327_s18] ss:$0 sm:$0xff] }
  0x16   : > { %686 = vmatprep.subr.bf16.mxu1 %v712_v0 }
  0x17   : > { %682 = vmatpush3.bf16.msra.mxu0 %v681_v11 }
  0x19   : > { %688 = vmatpush3.bf16.msra.mxu1 %v687_v16 }
  0x1a   : > { %664 = vmatmul.mubr.msk.f32.vlgmr.msra.gmra.mrb[0].mxu0 %vm351_vm1, %v332_v13 }
  0x91   : > { %v342_v18 = vpop.permute.xlu0 %341 }
  0x92   : > { %v350_v19 = vmul.f32 %v637_v17, %v342_v18 }
  0xed   : > { %v421_v20 = vpop.f32.mrb[0].mxu0 }
  0xee   : > { %v422_v21 = vadd.f32 %v421_v20, %v350_v19  ;;  %v665_v22 = vpop.f32.mrb[1].mxu0 }
  0xf0   : > { %675 = vmatmul.mubr.msk.f32.vlgmr.msra.gmra.mrb[0].mxu1 %vm351_vm1, %v422_v21 }
 0x1c3   : > { %v505_v24 = vpop.f32.mrb[0].mxu1 }
 0x1c4   : > { %v506_v25 = vadd.f32 %v639_v23, %v505_v24  ;;  %v676_v26 = vpop.f32.mrb[1].mxu1 }
 0x1c6   : > { %v509_v27 = vmul.f32 %v506_v25, %v506_v25 }
 0x1c8   : > { %v511_v28 = vsel %vm510_vm2, %v509_v27, 0.0 }
 0x1c9   : > { %512 = vadd.xlane.f32.xlu0 %v511_v28 }
 0x256   : > { %v513_v29 = vpop.xlane.xlu0 %512 }
 0x257   : > { %v514_v30 = vmax.f32 %v513_v29, 1e-24 }
 0x259   : > { %702 = vrsqrt.f32 %v514_v30 }
 0x263   : > { %v703_v31 = vpop.eup %702 }
 0x264   : > { %v516_v32 = vmul.f32 %v703_v31, %v506_v25 }
 0x266   : > { %517 = vst.msk [vmem:[%s331_s23] sm:$0xf] %vm510_vm2, %v516_v32 }
 0x267 PF: > { %s16_s21 = sadd.s32 1, %s710_s21  }
 0x268   : > { %p13_p4 = scmp.ge.s32.totalorder %s16_s21, 6  }
 0x26a   :  { %15 = sbr.rel (!%p13_p4) target bundleno = 1 (0x1), region = 89 }

// kernel: vtc_forward.5
= control target key start
LH: loop header
LB: loop body
LE: loop exit
PB: predicated region body
PF: predicated region fallthrough
CT: control target
= control target key end

     0   :  { %v38_v1 = vlaneseq  ;;  %v428_v2 = vmov 0.0   ;;  %s526_s0 = inlined_call_operand.vmem [shape: f32[4,8,32], index: 0, kind: input, shape index: {}]   ;;  %s527_s1 = inlined_call_operand.vmem [shape: bf16[32,32], index: 1, kind: input, shape index: {}]   ;;  %s528_s2 = inlined_call_operand.vmem [shape: f32[1,32], index: 2, kind: input, shape index: {}]   ;;  %s529_s3 = inlined_call_operand.vmem [shape: f32[4,8], index: 3, kind: input, shape index: {}]   ;;  %s530_s4 = inlined_call_operand.hbm [shape: f32[4,8,32], index: 4, kind: output, shape index: {0}]   ;;  %s531_s5 = inlined_call_operand.vmem [shape: f32[4,32], index: 5, kind: output, shape index: {1}]  }
   0x1   :  { %v402_v0 = vld [vmem:[%s527_s1] sm:$0xff]   ;;  %365 = vmatprep.subr.bf16.mxu0 %v428_v2  ;;  %373 = vmatprep.subr.bf16.mxu1 %v428_v2  ;;  %v403_v3 = vld [vmem:[%s527_s1 + $0x8] sm:$0xff]  }
   0x2   :  { %366 = vmatpush3.bf16.msra.mxu0 %v402_v0  ;;  %374 = vmatpush3.bf16.msra.mxu1 %v402_v0  ;;  %v21_v4 = vld [vmem:[%s526_s0] sm:$0xff]  ;;  %v22_v5 = vld [vmem:[%s526_s0 + $0x8] sm:$0xff]  ;;  %v39_v6 = vshrl.u32 %v38_v1, 7 }
   0x3   :  { %367 = vmatprep.subr.bf16.mxu0 %v428_v2  ;;  %375 = vmatprep.subr.bf16.mxu1 %v428_v2  ;;  %v37_v7 = vld [vmem:[%s529_s3] sm:$0xf] }
   0x4   :  { %11 = vsyncpa [#allocation3], 0  ;;  %vm429_vm0 = vmmov 0   ;;  %v40_v8 = vsub.s32 0, %v39_v6  ;;  %v54_v9 = vsub.s32 2, %v39_v6  ;;  %v120_v10 = vpack.c.bf16 %v21_v4, %v21_v4  ;;  %v23_v18 = vld [vmem:[%s526_s0 + $0x10] sm:$0xff] }
   0x5   :  { %369 = vmatprep.mubr.msk.bf16.mxu0 %vm429_vm0, %v428_v2  ;;  %377 = vmatprep.mubr.msk.bf16.mxu1 %vm429_vm0, %v428_v2  ;;  %v121_v11 = vpack.c.bf16 %v22_v5, %v22_v5  ;;  %v47_v12 = vsub.s32 1, %v39_v6  ;;  %v61_v13 = vsub.s32 3, %v39_v6  ;;  %vm77_vm1 = vcmask 261120   ;;  %v24_v19 = vld [vmem:[%s526_s0 + $0x18] sm:$0xff]  ;;  %v346_v63 = vld [vmem:[%s528_s2] ss:$0 sm:$0xff] }
   0x6   :  { %368 = vmatpush3.bf16.msra.mxu0 %v403_v3  ;;  %376 = vmatpush3.bf16.msra.mxu1 %v403_v3  ;;  %v41_v14 = vrot.slane %v37_v7, %v40_v8  ;;  %v55_v15 = vrot.slane %v37_v7, %v54_v9  ;;  %v122_v20 = vpack.c.bf16 %v23_v18, %v23_v18  ;;  %vm29_vm2 = vcmask 257024   ;;  %s430_s12 = smov [#allocation2]  }
   0x7   :  { %381 = vmatprep.subr.bf16.mxu0 %v428_v2  ;;  %389 = vmatprep.subr.bf16.mxu1 %v428_v2  ;;  %v48_v16 = vrot.slane %v37_v7, %v47_v12  ;;  %v62_v17 = vrot.slane %v37_v7, %v61_v13  ;;  %v123_v21 = vpack.c.bf16 %v24_v19, %v24_v19  ;;  %vm110_vm3 = vcmask 1041409  }
   0x8   :  { %43 = vbcast.lane.b32.xlu0 %v41_v14, 256  ;;  %57 = vbcast.lane.b32.xlu1 %v55_v15, 256  ;;  %30 = vst.msk [vmem:[%s531_s5] sm:$0xf] %vm29_vm2, %v428_v2  ;;  %vm112_vm4 = vcmask 1042434   ;;  %vm114_vm5 = vcmask 1043459  }
   0x9   :  { %370 = vmatmul.mubr.msk.bf16.vlgmr.msra.gmra.mrb[0].mxu0 %vm77_vm1, %v120_v10  ;;  %378 = vmatmul.mubr.msk.bf16.vlgmr.msra.gmra.mrb[0].mxu1 %vm77_vm1, %v121_v11 }
   0xa   :  { %382 = vmatpush3.bf16.msra.mxu0 %v402_v0  ;;  %390 = vmatpush3.bf16.msra.mxu1 %v402_v0 }
   0xb   :  { %383 = vmatprep.subr.bf16.mxu0 %v428_v2  ;;  %391 = vmatprep.subr.bf16.mxu1 %v428_v2 }
   0xc   :  { %385 = vmatprep.mubr.msk.bf16.mxu0 %vm429_vm0, %v428_v2  ;;  %393 = vmatprep.mubr.msk.bf16.mxu1 %vm429_vm0, %v428_v2 }
   0xd   :  { %50 = vbcast.lane.b32.xlu0 %v48_v16, 256  ;;  %64 = vbcast.lane.b32.xlu1 %v62_v17, 256 }
   0xe   :  { %384 = vmatpush3.bf16.msra.mxu0 %v403_v3  ;;  %392 = vmatpush3.bf16.msra.mxu1 %v403_v3 }
   0xf   :  { %v76_v59 = vld [vmem:[%s531_s5] sm:$0xf] }
  0x11   :  { %386 = vmatmul.mubr.msk.bf16.vlgmr.msra.gmra.mrb[4].mxu0 %vm77_vm1, %v122_v20  ;;  %394 = vmatmul.mubr.msk.bf16.vlgmr.msra.gmra.mrb[4].mxu1 %vm77_vm1, %v123_v21 }
  0x7a   :  { %v44_v22 = vpop.permute.xlu0 %43  ;;  %v58_v23 = vpop.permute.xlu1 %57 }
  0x7b   :  { %v66_v24 = vmul.f32 %v44_v22, %v21_v4  ;;  %v68_v25 = vmul.f32 %v58_v23, %v23_v18 }
  0x7d   :  { %v78_v26 = vsel %vm77_vm1, %v66_v24, 0.0  ;;  %v92_v27 = vsel %vm77_vm1, %v68_v25, 0.0 }
  0x7e   :  { %v79_v28 = vrot.slane %v78_v26, 4  ;;  %v93_v29 = vrot.slane %v92_v27, 4 }
  0x7f   :  { %v51_v30 = vpop.permute.xlu0 %50  ;;  %v65_v31 = vpop.permute.xlu1 %64 }
  0x80   :  { %v80_v32 = vadd.f32 %v79_v28, %v78_v26  ;;  %v94_v33 = vadd.f32 %v93_v29, %v92_v27  ;;  %v67_v34 = vmul.f32 %v51_v30, %v22_v5  ;;  %v69_v35 = vmul.f32 %v65_v31, %v24_v19 }
  0x82   :  { %v81_v36 = vrot.slane %v80_v32, 2  ;;  %v95_v37 = vrot.slane %v94_v33, 2  ;;  %v85_v38 = vsel %vm77_vm1, %v67_v34, 0.0  ;;  %v99_v39 = vsel %vm77_vm1, %v69_v35, 0.0 }
  0x83   :  { %v86_v40 = vrot.slane %v85_v38, 4  ;;  %v100_v41 = vrot.slane %v99_v39, 4 }
  0x84   :  { %v82_v42 = vadd.f32 %v81_v36, %v80_v32  ;;  %v96_v43 = vadd.f32 %v95_v37, %v94_v33 }
  0x85   :  { %v87_v44 = vadd.f32 %v86_v40, %v85_v38  ;;  %v101_v45 = vadd.f32 %v100_v41, %v99_v39 }
  0x86   :  { %v83_v46 = vrot.slane %v82_v42, 1  ;;  %v97_v49 = vrot.slane %v96_v43, 1 }
  0x87   :  { %v88_v47 = vrot.slane %v87_v44, 2  ;;  %v102_v48 = vrot.slane %v101_v45, 2 }
  0x88   :  { %v84_v52 = vadd.f32 %v83_v46, %v82_v42  ;;  %v98_v55 = vadd.f32 %v97_v49, %v96_v43 }
  0x89   :  { %v89_v50 = vadd.f32 %v88_v47, %v87_v44  ;;  %v103_v51 = vadd.f32 %v102_v48, %v101_v45 }
  0x8b   :  { %v90_v53 = vrot.slane %v89_v50, 1  ;;  %v104_v54 = vrot.slane %v103_v51, 1 }
  0x8d   :  { %v91_v56 = vadd.f32 %v90_v53, %v89_v50  ;;  %v105_v57 = vadd.f32 %v104_v54, %v103_v51 }
  0x8f   :  { %v111_v58 = vsel %vm110_vm3, %v91_v56, %v84_v52 }
  0x90   :  { %v113_v60 = vsel %vm112_vm4, %v98_v55, %v111_v58 }
  0x91   :  { %v115_v61 = vsel %vm114_vm5, %v105_v57, %v113_v60 }
  0x92   :  { %v117_v62 = vadd.f32 %v115_v61, %v76_v59 }
  0x94   :  { %119 = vst.msk [vmem:[%s531_s5] sm:$0xf] %vm29_vm2, %v117_v62  ;;  %s331_s5 = sshll.u32 %s430_s12, 4  ;;  %s332_s5 = int_to_ptr.vmem [resolvable:$true] %s331_s5 }
  0x95   :  { %s404_s2 = scalar_lea.vmem %s332_s5, 512  ;;  %p409_p1 = scmp.lt.s32.totalorder %s332_s5, %s332_s5 }
  0x96   :  { %p405_p0 = scmp.ne.s32.totalorder %s332_s5, %s404_s2  ;;  %p410_p2 = scmp.lt.s32.totalorder %s404_s2, %s404_s2 }
  0x98   :  { %p411_p3 = por %p410_p2, %p409_p1 }
  0x9a   :  { %p412_p4 = pnand %p411_p3, %p405_p0 }
  0xdc   :  { %v184_v0 = vpop.f32.mrb[0].mxu0  ;;  %v228_v1 = vpop.f32.mrb[0].mxu1 }
  0xdd   :  { %v185_v2 = vadd.f32 %v346_v63, %v184_v0  ;;  %v229_v3 = vadd.f32 %v346_v63, %v228_v1  ;;  %v371_v4 = vpop.f32.mrb[1].mxu0  ;;  %v379_v5 = vpop.f32.mrb[1].mxu1 }
  0xde   :  { %v187_v6 = vpop.f32.mrb[2].mxu0  ;;  %v231_v7 = vpop.f32.mrb[2].mxu1 }
  0xdf   :  { %190 = vst.msk [vmem:[#allocation2] sm:$0xff] %vm77_vm1, %v185_v2  ;;  %235 = vst.msk [vmem:[#allocation2 + $0x8] sm:$0xff] %vm77_vm1, %v229_v3  ;;  %v372_v8 = vpop.f32.mrb[3].mxu0  ;;  %v380_v9 = vpop.f32.mrb[3].mxu1 }
  0xe4   :  { %v273_v10 = vpop.f32.mrb[4].mxu0  ;;  %v318_v11 = vpop.f32.mrb[4].mxu1 }
  0xe5   :  { %v274_v12 = vadd.f32 %v346_v63, %v273_v10  ;;  %v319_v13 = vadd.f32 %v346_v63, %v318_v11  ;;  %v387_v14 = vpop.f32.mrb[5].mxu0  ;;  %v395_v15 = vpop.f32.mrb[5].mxu1 }
  0xe6   :  { %v276_v16 = vpop.f32.mrb[6].mxu0  ;;  %v321_v17 = vpop.f32.mrb[6].mxu1 }
  0xe7   :  { %280 = vst.msk [vmem:[#allocation2 + $0x10] sm:$0xff] %vm77_vm1, %v274_v12  ;;  %325 = vst.msk [vmem:[#allocation2 + $0x18] sm:$0xff] %vm77_vm1, %v319_v13  ;;  %v388_v18 = vpop.f32.mrb[7].mxu0  ;;  %v396_v19 = vpop.f32.mrb[7].mxu1 }
  0xe8   :  { %415 = shalt.err (!%p412_p4)
}
  0xe9   :  { %s416_s15 = scalar_lea.hbm %s530_s4, 512 }
  0xea   :  { %p417_p5 = scmp.ne.s32.totalorder %s530_s4, %s416_s15  ;;  %p420_p6 = scmp.lt.u32.totalorder %s416_s15, %s530_s4 }
  0xec   :  { %p422_p7 = pnand %p420_p6, %p417_p5 }
  0xee   :  { %425 = shalt.err (!%p422_p7)
}
  0xef   :  { %s431_s20 = smov 128   ;;  %s432_s21 = smov 8  }
  0xf0   :  { %337 = dma.vmem_to_hbm [thread:$0]  %s332_s5, 512, %s530_s4, [#allocation3], %s431_s20, %s431_s20, %s432_s21  }
  0xf1   :  { %426 = dma.done.wait [#allocation3], 512  }
  0xf2   :  { %427 = vsyncadd [#allocation3], 4294966784 }
  0xf3   :  { %345 = vsyncpa [#allocation3], 1 }

// kernel: vtc_forward.7
= control target key start
LH: loop header
LB: loop body
LE: loop exit
PB: predicated region body
PF: predicated region fallthrough
CT: control target
= control target key end

     0   :  { %17 = vsyncpa [#allocation5], 0  ;;  %s1505_s0 = inlined_call_operand.vmem [shape: bf16[4,32], index: 0, kind: input, shape index: {}]   ;;  %s1506_s1 = inlined_call_operand.vmem [shape: bf16[4,32], index: 1, kind: input, shape index: {}]   ;;  %s1507_s2 = inlined_call_operand.vmem [shape: bf16[4,32], index: 2, kind: input, shape index: {}]   ;;  %s1508_s3 = inlined_call_operand.vmem [shape: bf16[4,32], index: 3, kind: input, shape index: {}]   ;;  %s1509_s4 = inlined_call_operand.vmem [shape: bf16[32,4], index: 4, kind: input, shape index: {}]   ;;  %s1510_s5 = inlined_call_operand.vmem [shape: bf16[32,4], index: 5, kind: input, shape index: {}]   ;;  %s1511_s6 = inlined_call_operand.vmem [shape: bf16[32,200], index: 6, kind: input, shape index: {}]   ;;  %s1512_s7 = inlined_call_operand.vmem [shape: bf16[32,200], index: 7, kind: input, shape index: {}]   ;;  %s1513_s8 = inlined_call_operand.vmem [shape: s32[4,1], index: 8, kind: input, shape index: {}]   ;;  %s1514_s9 = inlined_call_operand.vmem [shape: s32[1,4], index: 9, kind: input, shape index: {}]   ;;  %s1515_s10 = inlined_call_operand.vmem [shape: s32[1,200], index: 10, kind: input, shape index: {}]   ;;  %s1516_s11 = inlined_call_operand.vmem [shape: f32[1,2], index: 11, kind: input, shape index: {}]   ;;  %s1517_s12 = inlined_call_operand.vmem [shape: f32[4,1], index: 12, kind: output, shape index: {}]  }
   0x1   :  { %s46_s23 = sshll.u32 %s1516_s11, 4  ;;  %s47_s23 = int_to_ptr.vmem [resolvable:$true] %s46_s23 }
   0x2   :  { %s1050_s24 = scalar_lea.vmem %s47_s23, 16  ;;  %p1055_p1 = scmp.lt.s32.totalorder %s47_s23, %s47_s23 }
   0x3   :  { %p1051_p0 = scmp.ne.s32.totalorder %s47_s23, %s1050_s24  ;;  %p1056_p2 = scmp.lt.s32.totalorder %s1050_s24, %s1050_s24 }
   0x5   :  { %p1057_p3 = por %p1056_p2, %p1055_p1 }
   0x7   :  { %p1058_p4 = pnand %p1057_p3, %p1051_p0 }
   0x9   :  { %1061 = shalt.err (!%p1058_p4)
}
   0xa   :  { %s1064_s25 = smov [#allocation4]  }
   0xb   :  { %49 = dma.vmem_to_smem %s47_s23, 16, %s1064_s25, [#allocation5]  }
   0xc   :  { %1062 = dma.done.wait [#allocation5], 16  }
   0xd   :  { %1063 = vsyncadd [#allocation5], 4294967280 }
   0xe   :  { %53 = sfence }
   0xf   :  { %v980_v0 = vld [vmem:[%s1509_s4] sm:$0xff]   ;;  %v60_v1 = vlaneseq  ;;  %v1065_v2 = vmov 0.0   ;;  %v982_v4 = vld [vmem:[%s1509_s4 + $0x8] sm:$0xff]   ;;  %vm1066_vm0 = vmmov 0   ;;  %vm66_vm3 = vcmask 60416   ;;  %s921_s15 = sld [smem:[#allocation4 + $0x1]] }
  0x10   :  { %948 = vmatprep.subr.bf16.mxu0 %v1065_v2  ;;  %956 = vmatprep.subr.bf16.mxu1 %v1065_v2  ;;  %v981_v3 = vld [vmem:[%s1510_s5] sm:$0xff]   ;;  %v983_v6 = vld [vmem:[%s1510_s5 + $0x8] sm:$0xff]   ;;  %v1067_v9 = vmov 1983009808   ;;  %v1068_v15 = vmov 0   ;;  %vm80_vm5 = vcmask 1041408  }
  0x11   :  { %949 = vmatpush3.bf16.msra.mxu0 %v980_v0  ;;  %952 = vmatprep.mubr.msk.bf16.mxu0 %vm1066_vm0, %v1065_v2  ;;  %v1154_v5 = vand.u32 127, %v60_v1  ;;  %v984_v8 = vld [vmem:[%s1506_s1] ss:$0 sps:$4 sm:$0x33]   ;;  %v74_v10 = vunpack.c.l.s4 %v1067_v9  ;;  %v1168_v11 = vshrl.u32 %v60_v1, 7  ;;  %vm129_vm6 = vcmask 261120  }
  0x12   :  { %957 = vmatpush3.bf16.msra.mxu1 %v981_v3  ;;  %950 = vmatprep.subr.bf16.mxu0 %v1065_v2  ;;  %v985_v12 = vld [vmem:[%s1508_s3] ss:$0 sps:$4 sm:$0x33]   ;;  %v988_v24 = vld [vmem:[%s1511_s6 + $0x4] ss:$8 sps:$4 sm:$0xff]   ;;  %vm259_vm7 = vcmask 31748  }
  0x13   :  { %958 = vmatprep.subr.bf16.mxu1 %v1065_v2  ;;  %vm62_vm1 = vcmp.eq.s32.totalorder %v1154_v5, 0  ;;  %vm63_vm2 = vcmp.eq.s32.totalorder %v1154_v5, 2  ;;  %960 = vmatprep.mubr.msk.bf16.mxu1 %vm1066_vm0, %v1065_v2  ;;  %v75_v13 = vunpack.c.0.s8 %v74_v10  ;;  %v101_v14 = vld [vmem:[%s1513_s8] sm:$0xf]  ;;  %v991_v26 = vld [vmem:[%s1512_s7 + $0x4] ss:$8 sps:$4 sm:$0xff]  }
  0x14   :  { %vm64_vm4 = vmor %vm62_vm1, %vm63_vm2  ;;  %974 = vset.pattern.permute.xlu1 %v1068_v15  ;;  %v69_v17 = vld [vmem:[%s1505_s0] sm:$0x3]  ;;  %v994_v27 = vld [vmem:[%s1511_s6 + $0x14] ss:$8 sps:$4 sm:$0xff]   ;;  %vm234_vm8 = vcmask 27648   ;;  %v1069_v53 = vmov 2  }
  0x15   :  { %951 = vmatpush3.bf16.msra.mxu0 %v982_v4  ;;  %v65_v7 = vsel %vm64_vm4, -1e+30, %v1065_v2  ;;  %v78_v16 = vsub.s32 %v75_v13, %v1168_v11  ;;  %104 = vperm.xlu1 %974, %v101_v14   ;;  %v84_v18 = vld [vmem:[%s1507_s2] sm:$0x3]  ;;  %v997_v28 = vld [vmem:[%s1512_s7 + $0x14] ss:$8 sps:$4 sm:$0xff]   ;;  %v1219_v33 = vstv %s921_s15 }
  0x16   :  { %959 = vmatpush3.bf16.msra.mxu1 %v983_v6  ;;  %67 = vst.msk [vmem:[#allocation2] sm:$0xf] %vm66_vm3, %v65_v7  ;;  %68 = vst.msk [vmem:[#allocation3] sm:$0xf] %vm66_vm3, %v65_v7  ;;  %v986_v23 = vld [vmem:[%s1511_s6] ss:$8 sps:$4 sm:$0xff]   ;;  %477 = vmatprep.subr.bf16.mxu0 %v988_v24 }
  0x17   :  { %v79_v19 = vrot.slane %v984_v8, %v78_v16  ;;  %v94_v20 = vrot.slane %v985_v12, %v78_v16  ;;  %v989_v25 = vld [vmem:[%s1512_s7] ss:$8 sps:$4 sm:$0xff]   ;;  %547 = vmatprep.subr.bf16.mxu1 %v991_v26  ;;  %v992_v29 = vld [vmem:[%s1511_s6 + $0x10] ss:$8 sps:$4 sm:$0xff]   ;;  %975 = vset.pattern.permute.xlu0 %v1069_v53  ;;  %s1070_s6 = smov 1   ;;  %vm630_vm11 = vcmask 1047556  }
  0x18   :  { %v995_v30 = vld [vmem:[%s1512_s7 + $0x10] ss:$8 sps:$4 sm:$0xff]   ;;  %v922_v31 = vld [vmem:[%s1514_s9] ss:$0 sm:$0xff]  ;;  %s1071_s7 = smov 2   ;;  %vm632_vm12 = vcmask 588804  }
  0x19   :  { %v83_v21 = vsel %vm80_vm5, %v69_v17, %v79_v19  ;;  %v97_v22 = vsel %vm80_vm5, %v84_v18, %v94_v20  ;;  %vm595_vm13 = vcmask 1043456   ;;  %vm597_vm14 = vcmask 584704   ;;  %s1495_s1 = sld [smem:[#allocation4]]  ;;  %s1073_s20 = smov 124  }
  0x1a   :  { %953 = vmatmul.mubr.msk.bf16.vlgmr.msra.gmra.mrb[0].mxu0 %vm129_vm6, %v83_v21  ;;  %961 = vmatmul.mubr.msk.bf16.vlgmr.msra.gmra.mrb[0].mxu1 %vm129_vm6, %v97_v22  ;;  %vm315_vm15 = vcmask 7168   ;;  %vm317_vm0 = vcmask 15360   ;;  %vm319_vm1 = vcmask 23552   ;;  %vm321_vm2 = vcmask 31744  }
  0x1b   :  { %509 = vmatprep.mubr.bf16.mxu0 %v1068_v15  ;;  %579 = vmatprep.mubr.bf16.mxu1 %v1068_v15  ;;  %vm323_vm4 = vcmask 39936   ;;  %vm325_vm5 = vcmask 48128  }
  0x1c   :  { %478 = vmatpush1.bf16.msra.mxu0 %v986_v23  ;;  %548 = vmatpush1.bf16.msra.mxu1 %v989_v25 }
  0x1d   :  { %479 = vmatprep.subr.bf16.mxu0 %v994_v27  ;;  %549 = vmatprep.subr.bf16.mxu1 %v997_v28  ;;  %v1241_v54 = vld [vmem:[#allocation2] sm:$0xf]  ;;  %v1246_v59 = vld [vmem:[#allocation3] sm:$0xf] }
  0x1f   :  { %s866_s19 = ssub.f32 1.0, %s1495_s1 }
  0x20   :  { %480 = vmatpush1.bf16.msra.mxu0 %v992_v29  ;;  %550 = vmatpush1.bf16.msra.mxu1 %v995_v30 }
  0x23   :  { %936 = vmatmul.mubr.msk.bf16.vlgmr.msra.gmra.mrb[4].mxu0 %vm129_vm6, %v83_v21  ;;  %941 = vmatmul.mubr.msk.bf16.vlgmr.msra.gmra.mrb[4].mxu1 %vm129_vm6, %v97_v22  ;;  %vm327_vm6 = vcmask 56320  }
  0x94   :  { %v105_v32 = vpop.permute.xlu1 %104 }
  0x95   :  { %vm110_vm9 = vcmp.eq.s32.totalorder %v105_v32, %v922_v31 }
  0x96   :  { %v923_v46 = vsel %vm110_vm9, 1.0, %v1065_v2 }
  0x97   :  { %v311_v12 = vsel %vm234_vm8, %v923_v46, 0.0 }
  0xed   :  { %v166_v34 = vpop.f32.mrb[0].mxu0  ;;  %v226_v35 = vpop.f32.mrb[0].mxu1 }
  0xee   :  { %v1222_v36 = vmul.f32 %v1219_v33, %v166_v34  ;;  %v954_v37 = vpop.f32.mrb[1].mxu0  ;;  %v1225_v38 = vmul.f32 %v226_v35, %v1219_v33  ;;  %v962_v39 = vpop.f32.mrb[1].mxu1 }
  0xef   :  { %v169_v40 = vpop.f32.mrb[2].mxu0  ;;  %v229_v41 = vpop.f32.mrb[2].mxu1 }
  0xf0   :  { %v955_v42 = vpop.f32.mrb[3].mxu0  ;;  %v963_v43 = vpop.f32.mrb[3].mxu1  ;;  %v260_v44 = vsel %vm259_vm7, %v1222_v36, -inf  ;;  %v235_v45 = vsel %vm234_vm8, %v1222_v36, -inf  ;;  %v356_v47 = vsel %vm259_vm7, %v1225_v38, -inf  ;;  %v332_v48 = vsel %vm234_vm8, %v1225_v38, -inf }
  0xf1   :  { %261 = vmax.xlane.f32.xlu0 %v260_v44  ;;  %236 = vmax.xlane.f32.xlu1 %v235_v45  ;;  %v402_v49 = vmul.f32 %v923_v46, %v1225_v38  ;;  %v306_v50 = vmul.f32 %v923_v46, %v1222_v36 }
  0xf3   :  { %v403_v51 = vsel %vm234_vm8, %v402_v49, 0.0  ;;  %v307_v52 = vsel %vm234_vm8, %v306_v50, 0.0 }
  0xf5   :  { %357 = vmax.xlane.f32.xlu0 %v356_v47  ;;  %333 = vmax.xlane.f32.xlu1 %v332_v48 }
  0xf6   :  { %v511_v19 = vpop.f32.mrb[4].mxu0  ;;  %v581_v20 = vpop.f32.mrb[4].mxu1 }
  0xf7   :  { %v513_v21 = vpop.f32.mrb[5].mxu0  ;;  %v583_v22 = vpop.f32.mrb[5].mxu1 }
  0xf8   :  { %v515_v23 = vpop.f32.mrb[6].mxu0  ;;  %v585_v24 = vpop.f32.mrb[6].mxu1 }
  0xf9   :  { %404 = vadd.xlane.f32.xlu0 %v403_v51  ;;  %308 = vadd.xlane.f32.xlu1 %v307_v52  ;;  %v516_v25 = vpop.f32.mrb[7].mxu0  ;;  %v586_v26 = vpop.f32.mrb[7].mxu1  ;;  %v392_v52 = vrot.slane %v1225_v38, 4 }
 0x17e   :  { %v262_v55 = vpop.xlane.xlu0 %261  ;;  %v237_v56 = vpop.xlane.xlu1 %236 }
 0x17f   :  { %v264_v57 = vrot.slane %v262_v55, 4  ;;  %v1244_v58 = vmax.f32 %v1241_v54, %v237_v56  ;;  %v296_v55 = vrot.slane %v1222_v36, 4 }
 0x181   :  { %v1249_v60 = vmax.f32 %v1241_v54, %v264_v57  ;;  %241 = vperm.xlu1 %974, %v1244_v58   ;;  %v247_v10 = vsub.f32 %v1241_v54, %v1244_v58 }
 0x182   :  { %v358_v61 = vpop.xlane.xlu0 %357  ;;  %v334_v62 = vpop.xlane.xlu1 %333 }
 0x183   :  { %v1253_v63 = vmax.f32 %v1246_v59, %v334_v62  ;;  %272 = vperm.xlu0 %975, %v1249_v60   ;;  %v360_v0 = vrot.slane %v358_v61, 4  ;;  %v267_v1 = vsub.f32 %v1241_v54, %v1249_v60  ;;  %v248_v13 = vmul.f32 1.442695, %v247_v10 }
 0x185   :  { %v344_v3 = vsub.f32 %v1246_v59, %v1253_v63  ;;  %338 = vperm.xlu1 %974, %v1253_v63   ;;  %v1263_v6 = vmax.f32 %v1246_v59, %v360_v0  ;;  %v268_v7 = vmul.f32 1.442695, %v267_v1 }
 0x186   :  { %v1276_v27 = vpop.xlane.xlu1 %308  ;;  %v1278_v28 = vpop.xlane.xlu0 %404 }
 0x187   :  { %v345_v4 = vmul.f32 1.442695, %v344_v3  ;;  %977 = vset.pattern.permute.xlu0 %v1068_v15  ;;  %v363_v14 = vsub.f32 %v1246_v59, %v1263_v6  ;;  %v1302_v3 = vmul.f32 %v581_v20, %v1219_v33 }
 0x189   :  { %998 = vpow2.f32 %v345_v4  ;;  %976 = vset.pattern.permute.xlu1 %v1069_v53  ;;  %v364_v16 = vmul.f32 1.442695, %v363_v14  ;;  %v1305_v4 = vmul.f32 %v513_v21, %v1219_v33 }
 0x18a   :  { %368 = vperm.xlu1 %976, %v1263_v6   ;;  %1000 = vpow2.f32 %v268_v7 }
 0x18b   :  { %1002 = vpow2.f32 %v248_v13 }
 0x18c   :  { %1004 = vpow2.f32 %v364_v16 }
 0x193   :  { %v999_v8 = vpop.eup %998 }
 0x194   :  { %348 = vrot.lane.b32.xlu0 %v999_v8, %s1070_s6  ;;  %v1001_v9 = vpop.eup %1000  ;;  %v761_v8 = vsel %vm630_vm11, %v1302_v3, -inf }
 0x195   :  { %v1003_v17 = vpop.eup %1002 }
 0x196   :  { %v1005_v18 = vpop.eup %1004 }
 0x198   :  { %280 = vrot.lane.b32.xlu0 %v1001_v9, %s1070_s6 }
 0x1ae   :  { %312 = vadd.xlane.f32.xlu1 %v311_v12 }
 0x1bf   :  { %251 = vrot.lane.b32.xlu1 %v1003_v17, %s1070_s6 }
 0x1c3   :  { %376 = vrot.lane.b32.xlu1 %v1005_v18, %s1070_s6 }
 0x200   :  { %v242_v29 = vpop.permute.xlu1 %241 }
 0x201   :  { %v244_v30 = vsub.f32 %v1222_v36, %v242_v29 }
 0x202   :  { %v273_v31 = vpop.permute.xlu0 %272 }
 0x203   :  { %v245_v32 = vmul.f32 1.442695, %v244_v30  ;;  %v274_v34 = vrot.slane %v273_v31, 4 }
 0x204   :  { %v339_v35 = vpop.permute.xlu1 %338 }
 0x205   :  { %1006 = vpow2.f32 %v245_v32  ;;  %v276_v37 = vsub.f32 %v1222_v36, %v274_v34  ;;  %v341_v39 = vsub.f32 %v1225_v38, %v339_v35  ;;  %v1298_v36 = vmul.f32 %v583_v22, %v1219_v33  ;;  %v425_v22 = vld [vmem:[%s1513_s8] sm:$0xf] }
 0x206   :  { %v349_v26 = vpop.permute.xlu0 %348 }
 0x207   :  { %v277_v40 = vmul.f32 1.442695, %v276_v37  ;;  %v342_v41 = vmul.f32 1.442695, %v341_v39  ;;  %v351_v34 = vmul.f32 %v349_v26, %v1246_v59 }
 0x209   :  { %1008 = vpow2.f32 %v277_v40  ;;  %v369_v42 = vpop.permute.xlu1 %368 }
 0x20a   :  { %1010 = vpow2.f32 %v342_v41  ;;  %v370_v43 = vrot.slane %v369_v42, 4  ;;  %v281_v30 = vpop.permute.xlu0 %280 }
 0x20c   :  { %v372_v44 = vsub.f32 %v1225_v38, %v370_v43  ;;  %v1295_v38 = vadd.s32 128, %v1154_v5  ;;  %v1311_v5 = vmul.f32 %v511_v19, %v1219_v33 }
 0x20e   :  { %v373_v45 = vmul.f32 1.442695, %v372_v44  ;;  %vm424_vm10 = vcmp.lt.s32.totalorder %v1295_v38, 200  ;;  %v631_v13 = vsel %vm630_vm11, %v1311_v5, -inf  ;;  %v596_v33 = vsel %vm595_vm13, %v1311_v5, -inf }
 0x20f   :  { %v1007_v46 = vpop.eup %1006  ;;  %v727_v7 = vsel %vm424_vm10, %v1298_v36, -1e+30  ;;  %v594_v10 = vsel %vm424_vm10, %v1305_v4, -1e+30 }
 0x210   :  { %1012 = vpow2.f32 %v373_v45  ;;  %v255_v47 = vsel %vm234_vm8, %v1007_v46, 0.0  ;;  %v633_v14 = vsel %vm632_vm12, %v594_v10, -inf  ;;  %v598_v16 = vsel %vm597_vm14, %v594_v10, -inf }
 0x211   :  { %256 = vadd.xlane.f32.xlu1 %v255_v47  ;;  %v634_v17 = vmax.f32 %v631_v13, %v633_v14  ;;  %v729_v19 = vsel %vm597_vm14, %v727_v7, -inf  ;;  %v599_v20 = vmax.f32 %v596_v33, %v598_v16  ;;  %v283_v45 = vmul.f32 %v281_v30, %v1241_v54 }
 0x213   :  { %v1009_v48 = vpop.eup %1008 }
 0x214   :  { %v1011_v49 = vpop.eup %1010  ;;  %v284_v50 = vsel %vm259_vm7, %v1009_v48, 0.0  ;;  %v298_v62 = vmul.f32 %v1009_v48, %v296_v55 }
 0x215   :  { %285 = vadd.xlane.f32.xlu0 %v284_v50  ;;  %v352_v51 = vsel %vm234_vm8, %v1011_v49, 0.0 }
 0x216   :  { %353 = vadd.xlane.f32.xlu1 %v352_v51  ;;  %v299_v1 = vsel %vm259_vm7, %v298_v62, 0.0  ;;  %v406_v62 = vadd.f32 %v1278_v28, %v1246_v59 }
 0x21a   :  { %v1013_v56 = vpop.eup %1012 }
 0x21b   :  { %v380_v57 = vsel %vm259_vm7, %v1013_v56, 0.0  ;;  %v394_v61 = vmul.f32 %v1013_v56, %v392_v52 }
 0x21c   :  { %381 = vadd.xlane.f32.xlu1 %v380_v57 }
 0x21d   :  { %v395_v0 = vsel %vm259_vm7, %v394_v61, 0.0 }
 0x21e   :  { %396 = vadd.xlane.f32.xlu0 %v395_v0 }
 0x220   :  { %300 = vadd.xlane.f32.xlu1 %v299_v1 }
 0x231   :  { %291 = vrot.lane.b32.xlu1 %v1001_v9, %s1071_s7  ;;  %v762_v9 = vsel %vm632_vm12, %v727_v7, -inf }
 0x232   :  { %v763_v12 = vmax.f32 %v761_v8, %v762_v9 }
 0x234   :  { %387 = vrot.lane.b32.xlu0 %v1005_v18, %s1071_s7  ;;  %v728_v18 = vsel %vm595_vm13, %v1302_v3, -inf }
 0x235   :  { %v730_v21 = vmax.f32 %v728_v18, %v729_v19  ;;  %v432_v19 = vsub.s32 0, %v1168_v11 }
 0x23b   :  { %v313_v23 = vpop.xlane.xlu1 %312 }
 0x23c   :  { %v314_v28 = vadd.f32 %v313_v23, %v1241_v54 }
 0x23f   :  { %v252_v24 = vpop.permute.xlu1 %251 }
 0x240   :  { %v254_v37 = vmul.f32 %v252_v24, %v1241_v54  ;;  %v436_v24 = vsub.s32 1, %v1168_v11 }
 0x243   :  { %v377_v25 = vpop.permute.xlu1 %376 }
 0x244   :  { %v379_v42 = vmul.f32 %v377_v25, %v1246_v59 }
 0x253   :  { %764 = vmax.xlane.f32.xlu0 %v763_v12 }
 0x255   :  { %635 = vmax.xlane.f32.xlu1 %v634_v17 }
 0x257   :  { %600 = vmax.xlane.f32.xlu0 %v599_v20 }
 0x259   :  { %731 = vmax.xlane.f32.xlu1 %v730_v21 }
 0x26d   :  { %428 = vperm.xlu0 %977, %v425_v22  }
 0x271   :  { %979 = vset.pattern.permute.xlu0 %v1069_v53 }
 0x29e   :  { %v257_v29 = vpop.xlane.xlu1 %256 }
 0x29f   :  { %v258_v43 = vadd.f32 %v257_v29, %v254_v37 }
 0x2a1   :  { %v316_v51 = vsel %vm315_vm15, %v1244_v58, %v258_v43  ;;  %v407_v58 = vadd.f32 %v1246_v59, %v313_v23  ;;  %v426_v23 = vld [vmem:[%s1515_s10] sm:$0x3]  ;;  %s1072_s10 = smov 127  }
 0x2a2   :  { %v286_v32 = vpop.xlane.xlu0 %285  ;;  %v318_v1 = vsel %vm317_vm0, %v316_v51, %v1249_v60  ;;  %v433_v29 = vrot.slane %v426_v23, %v432_v19 }
 0x2a3   :  { %v354_v31 = vpop.xlane.xlu1 %353  ;;  %v288_v53 = vrot.slane %v286_v32, 4 }
 0x2a4   :  { %v355_v39 = vadd.f32 %v354_v31, %v351_v34  ;;  %v437_v34 = vrot.slane %v426_v23, %v436_v24 }
 0x2a5   :  { %v290_v52 = vadd.f32 %v288_v53, %v283_v45  ;;  %v1402_v53 = vsel %vm424_vm10, %v1298_v36, 0.0 }
 0x2a6   :  { %v408_v46 = vsel %vm315_vm15, %v1253_v63, %v355_v39 }
 0x2a7   :  { %v409_v56 = vsel %vm317_vm0, %v408_v46, %v1263_v6  ;;  %v310_v6 = vadd.f32 %v1276_v27, %v1241_v54  ;;  %v320_v9 = vsel %vm319_vm1, %v318_v1, %v290_v52 }
 0x2a9   :  { %v382_v35 = vpop.xlane.xlu1 %381 }
 0x2aa   :  { %v384_v40 = vrot.slane %v382_v35, 4 }
 0x2ab   :  { %v397_v41 = vpop.xlane.xlu0 %396 }
 0x2ac   :  { %v386_v47 = vadd.f32 %v384_v40, %v379_v42  ;;  %v399_v49 = vrot.slane %v397_v41, 4  ;;  %v1396_v42 = vsel %vm424_vm10, %v1305_v4, 0.0 }
 0x2ad   :  { %v301_v44 = vpop.xlane.xlu1 %300 }
 0x2ae   :  { %v303_v57 = vrot.slane %v301_v44, 4  ;;  %v410_v0 = vsel %vm319_vm1, %v409_v56, %v386_v47 }
 0x2af   :  { %v388_v48 = vpop.permute.xlu0 %387 }
 0x2b0   :  { %v390_v50 = vmul.f32 %v388_v48, %v1246_v59 }
 0x2b1   :  { %v292_v55 = vpop.permute.xlu1 %291 }
 0x2b2   :  { %v401_v61 = vadd.f32 %v399_v49, %v390_v50  ;;  %v294_v63 = vmul.f32 %v292_v55, %v1241_v54 }
 0x2b4   :  { %v411_v7 = vsel %vm321_vm2, %v410_v0, %v401_v61  ;;  %v305_v8 = vadd.f32 %v303_v57, %v294_v63 }
 0x2b5   :  { %v412_v10 = vsel %vm323_vm4, %v411_v7, %v406_v62 }
 0x2b6   :  { %v413_v12 = vsel %vm325_vm5, %v412_v10, %v407_v58  ;;  %v322_v13 = vsel %vm321_vm2, %v320_v9, %v305_v8 }
 0x2b7   :  { %v414_v59 = vsel %vm327_vm6, %v413_v12, 0.0  ;;  %v324_v60 = vsel %vm323_vm4, %v322_v13, %v310_v6 }
 0x2b8   :  { %415 = vst.msk [vmem:[#allocation3] sm:$0xf] %vm66_vm3, %v414_v59  ;;  %v326_v14 = vsel %vm325_vm5, %v324_v60, %v314_v28 }
 0x2b9   :  { %v328_v27 = vsel %vm327_vm6, %v326_v14, 0.0 }
 0x2ba   :  { %330 = vst.msk [vmem:[#allocation2] sm:$0xf] %vm66_vm3, %v328_v27 }
 0x2bf   :  { %v1380_v26 = vld [vmem:[#allocation3] sm:$0xf] }
 0x2c1   :  { %v1364_v54 = vld [vmem:[#allocation2] sm:$0xf] }
 0x2e0   :  { %v765_v33 = vpop.xlane.xlu0 %764 }
 0x2e1   :  { %v767_v20 = vrot.slane %v765_v33, 4 }
 0x2e2   :  { %v636_v16 = vpop.xlane.xlu1 %635 }
 0x2e3   :  { %v638_v17 = vrot.slane %v636_v16, 4  ;;  %v1383_v30 = vmax.f32 %v1380_v26, %v767_v20 }
 0x2e4   :  { %v601_v18 = vpop.xlane.xlu0 %600 }
 0x2e5   :  { %v1368_v21 = vmax.f32 %v1364_v54, %v638_v17  ;;  %v1371_v22 = vmax.f32 %v1364_v54, %v601_v18 }
 0x2e6   :  { %v732_v40 = vpop.xlane.xlu1 %731 }
 0x2e7   :  { %v616_v25 = vsub.f32 %v1364_v54, %v1371_v22  ;;  %646 = vperm.xlu1 %976, %v1368_v21   ;;  %v641_v31 = vsub.f32 %v1364_v54, %v1368_v21  ;;  %v1410_v46 = vmax.f32 %v1380_v26, %v732_v40 }
 0x2e9   :  { %v617_v32 = vmul.f32 1.442695, %v616_v25  ;;  %v642_v11 = vmul.f32 1.442695, %v641_v31  ;;  %v747_v63 = vsub.f32 %v1380_v26, %v1410_v46  ;;  %v807_v31 = vrot.slane %v1302_v3, 4 }
 0x2eb   :  { %775 = vperm.xlu1 %976, %v1383_v30   ;;  %1014 = vpow2.f32 %v617_v32  ;;  %v748_v62 = vmul.f32 1.442695, %v747_v63  ;;  %v808_v32 = vrot.slane %v1402_v53, 4 }
 0x2ec   :  { %v429_v35 = vpop.permute.xlu0 %428  ;;  %1016 = vpow2.f32 %v642_v11 }
 0x2ed   :  { %vm438_vm7 = vcmp.eq.s32.totalorder %v429_v35, %v433_v29  ;;  %vm439_vm8 = vcmp.eq.s32.totalorder %v429_v35, %v437_v34  ;;  %1018 = vpow2.f32 %v748_v62 }
 0x2ee   :  { %v930_v37 = vsel %vm438_vm7, 1.0, %v1065_v2  ;;  %v931_v39 = vsel %vm439_vm8, 1.0, %v1065_v2 }
 0x2ef   :  { %v449_v41 = vsel %vm424_vm10, %v931_v39, 0.0  ;;  %978 = vset.pattern.permute.xlu1 %v1068_v15  ;;  %v693_v43 = vmul.f32 %v930_v37, %v1311_v5  ;;  %v822_v44 = vmul.f32 %v930_v37, %v1302_v3  ;;  %v701_v51 = vsel %vm595_vm13, %v930_v37, 0.0 }
 0x2f0   :  { %605 = vperm.xlu1 %978, %v1371_v22   ;;  %v694_v2 = vmul.f32 %v1396_v42, %v449_v41  ;;  %v823_v15 = vmul.f32 %v1402_v53, %v449_v41  ;;  %v702_v52 = vsel %vm597_vm14, %v449_v41, 0.0 }
 0x2f1   :  { %v695_v45 = vsel %vm595_vm13, %v693_v43, 0.0  ;;  %v824_v49 = vsel %vm595_vm13, %v822_v44, 0.0  ;;  %v703_v57 = vadd.f32 %v702_v52, %v701_v51 }
 0x2f2   :  { %v696_v47 = vsel %vm597_vm14, %v694_v2, 0.0  ;;  %v825_v50 = vsel %vm597_vm14, %v823_v15, 0.0 }
 0x2f3   :  { %v697_v48 = vadd.f32 %v696_v47, %v695_v45  ;;  %v826_v56 = vadd.f32 %v825_v50, %v824_v49  ;;  %v770_v50 = vsub.f32 %v1380_v26, %v1383_v30 }
 0x2f4   :  { %736 = vperm.xlu1 %978, %v1410_v46  }
 0x2f5   :  { %698 = vadd.xlane.f32.xlu0 %v697_v48  ;;  %v1015_v55 = vpop.eup %1014  ;;  %v771_v63 = vmul.f32 1.442695, %v770_v50 }
 0x2f6   :  { %v1017_v61 = vpop.eup %1016 }
 0x2f7   :  { %v1019_v0 = vpop.eup %1018 }
 0x2f8   :  { %620 = vrot.lane.b32.xlu1 %v1015_v55, %s1070_s6 }
 0x2f9   :  { %827 = vadd.xlane.f32.xlu0 %v826_v56 }
 0x2fc   :  { %672 = vrot.lane.b32.xlu1 %v1017_v61, %s1071_s7 }
 0x2fd   :  { %704 = vadd.xlane.f32.xlu0 %v703_v57  ;;  %v678_v57 = vrot.slane %v1311_v5, 4 }
 0x313   :  { %659 = vrot.lane.b32.xlu0 %v1017_v61, %s1070_s6  ;;  %v679_v61 = vrot.slane %v1396_v42, 4 }
 0x317   :  { %751 = vrot.lane.b32.xlu0 %v1019_v0, %s1070_s6 }
 0x366   :  { %v647_v58 = vpop.permute.xlu1 %646 }
 0x367   :  { %v648_v7 = vrot.slane %v647_v58, 4 }
 0x369   :  { %v651_v10 = vsub.f32 %v1305_v4, %v648_v7  ;;  %v650_v14 = vsub.f32 %v1311_v5, %v648_v7 }
 0x36a   :  { %v776_v1 = vpop.permute.xlu1 %775 }
 0x36b   :  { %v777_v8 = vrot.slane %v776_v1, 4  ;;  %v654_v16 = vmul.f32 1.442695, %v651_v10  ;;  %v652_v20 = vmul.f32 1.442695, %v650_v14 }
 0x36d   :  { %v779_v6 = vsub.f32 %v1302_v3, %v777_v8  ;;  %v780_v9 = vsub.f32 %v1298_v36, %v777_v8 }
 0x36f   :  { %v781_v28 = vmul.f32 1.442695, %v779_v6  ;;  %v783_v12 = vmul.f32 1.442695, %v780_v9  ;;  %v606_v13 = vpop.permute.xlu1 %605 }
 0x370   :  { %v608_v59 = vsub.f32 %v1311_v5, %v606_v13  ;;  %v609_v60 = vsub.f32 %v1305_v4, %v606_v13 }
 0x371   :  { %1020 = vpow2.f32 %v781_v28 }
 0x372   :  { %1022 = vpow2.f32 %v783_v12  ;;  %v610_v27 = vmul.f32 1.442695, %v608_v59  ;;  %v612_v33 = vmul.f32 1.442695, %v609_v60 }
 0x373   :  { %v737_v17 = vpop.permute.xlu1 %736 }
 0x374   :  { %1024 = vpow2.f32 %v610_v27  ;;  %v739_v18 = vsub.f32 %v1302_v3, %v737_v17  ;;  %v740_v19 = vsub.f32 %v1298_v36, %v737_v17 }
 0x375   :  { %1026 = vpow2.f32 %v612_v33 }
 0x376   :  { %v741_v23 = vmul.f32 1.442695, %v739_v18  ;;  %v743_v24 = vmul.f32 1.442695, %v740_v19  ;;  %1028 = vpow2.f32 %v654_v16 }
 0x377   :  { %v621_v12 = vpop.permute.xlu1 %620 }
 0x378   :  { %1030 = vpow2.f32 %v741_v23  ;;  %v623_v17 = vmul.f32 %v621_v12, %v1364_v54 }
 0x379   :  { %1032 = vpow2.f32 %v743_v24 }
 0x37a   :  { %1034 = vpow2.f32 %v652_v20 }
 0x37b   :  { %v1021_v4 = vpop.eup %1020  ;;  %1036 = vpow2.f32 %v771_v63  ;;  %v673_v59 = vpop.permute.xlu1 %672 }
 0x37c   :  { %v1023_v25 = vpop.eup %1022  ;;  %v811_v11 = vmul.f32 %v1021_v4, %v807_v31  ;;  %v792_v62 = vsel %vm630_vm11, %v1021_v4, 0.0 }
 0x37d   :  { %v786_v29 = vsel %vm424_vm10, %v1023_v25, 0.0 }
 0x37e   :  { %v1025_v34 = vpop.eup %1024  ;;  %v812_v37 = vmul.f32 %v808_v32, %v786_v29  ;;  %v813_v15 = vsel %vm630_vm11, %v811_v11, 0.0  ;;  %v793_v0 = vsel %vm632_vm12, %v786_v29, 0.0 }
 0x37f   :  { %v1027_v35 = vpop.eup %1026  ;;  %v624_v36 = vsel %vm595_vm13, %v1025_v34, 0.0  ;;  %v794_v7 = vadd.f32 %v793_v0, %v792_v62 }
 0x380   :  { %v615_v39 = vsel %vm424_vm10, %v1027_v35, 0.0  ;;  %v1029_v40 = vpop.eup %1028  ;;  %v814_v3 = vsel %vm632_vm12, %v812_v37, 0.0  ;;  %v675_v35 = vmul.f32 %v673_v59, %v1364_v54 }
 0x381   :  { %v625_v41 = vsel %vm597_vm14, %v615_v39, 0.0  ;;  %v657_v48 = vsel %vm424_vm10, %v1029_v40, 0.0  ;;  %v815_v51 = vadd.f32 %v814_v3, %v813_v15 }
 0x382   :  { %v1031_v43 = vpop.eup %1030  ;;  %v626_v2 = vadd.f32 %v625_v41, %v624_v36  ;;  %v664_v56 = vsel %vm632_vm12, %v657_v48, 0.0  ;;  %v683_v1 = vmul.f32 %v679_v61, %v657_v48  ;;  %v699_v42 = vpop.xlane.xlu0 %698 }
 0x383   :  { %v1033_v44 = vpop.eup %1032  ;;  %v755_v53 = vsel %vm595_vm13, %v1031_v43, 0.0  ;;  %v700_v40 = vadd.f32 %v699_v42, %v1364_v54 }
 0x384   :  { %v1035_v45 = vpop.eup %1034  ;;  %627 = vadd.xlane.f32.xlu1 %v626_v2  ;;  %v746_v47 = vsel %vm424_vm10, %v1033_v44, 0.0  ;;  %v685_v6 = vsel %vm632_vm12, %v683_v1, 0.0 }
 0x385   :  { %v756_v49 = vsel %vm597_vm14, %v746_v47, 0.0  ;;  %v663_v55 = vsel %vm630_vm11, %v1035_v45, 0.0  ;;  %v682_v58 = vmul.f32 %v1035_v45, %v678_v57  ;;  %v1037_v5 = vpop.eup %1036 }
 0x386   :  { %v757_v52 = vadd.f32 %v756_v49, %v755_v53  ;;  %v665_v38 = vadd.f32 %v664_v56, %v663_v55  ;;  %v828_v10 = vpop.xlane.xlu0 %827 }
 0x387   :  { %v684_v8 = vsel %vm630_vm11, %v682_v58, 0.0 }
 0x388   :  { %816 = vadd.xlane.f32.xlu1 %v815_v51  ;;  %758 = vadd.xlane.f32.xlu0 %v757_v52  ;;  %v686_v9 = vadd.f32 %v685_v6, %v684_v8 }
 0x38a   :  { %v705_v28 = vpop.xlane.xlu0 %704 }
 0x38b   :  { %v706_v44 = vadd.f32 %v705_v28, %v1364_v54 }
 0x38c   :  { %666 = vadd.xlane.f32.xlu0 %v665_v38 }
 0x38e   :  { %v660_v13 = vpop.permute.xlu0 %659 }
 0x38f   :  { %v662_v23 = vmul.f32 %v660_v13, %v1364_v54  ;;  %v830_v54 = vadd.f32 %v1380_v26, %v705_v28 }
 0x390   :  { %795 = vadd.xlane.f32.xlu0 %v794_v7  ;;  %v864_v7 = vstv %s1495_s1 }
 0x392   :  { %v752_v60 = vpop.permute.xlu0 %751 }
 0x393   :  { %v754_v24 = vmul.f32 %v752_v60, %v1380_v26 }
 0x394   :  { %687 = vadd.xlane.f32.xlu0 %v686_v9 }
 0x399   :  { %788 = vrot.lane.b32.xlu1 %v1037_v5, %s1070_s6 }
 0x3aa   :  { %801 = vrot.lane.b32.xlu0 %v1037_v5, %s1071_s7  ;;  %v867_v5 = vstv %s866_s19 }
 0x411   :  { %v628_v14 = vpop.xlane.xlu1 %627 }
 0x412   :  { %v629_v18 = vadd.f32 %v628_v14, %v623_v17 }
 0x414   :  { %v708_v25 = vsel %vm315_vm15, %v1371_v22, %v629_v18 }
 0x415   :  { %v759_v27 = vpop.xlane.xlu0 %758  ;;  %v817_v16 = vpop.xlane.xlu1 %816  ;;  %v710_v37 = vsel %vm317_vm0, %v708_v25, %v1368_v21 }
 0x416   :  { %v760_v29 = vadd.f32 %v759_v27, %v754_v24  ;;  %v819_v15 = vrot.slane %v817_v16, 4 }
 0x418   :  { %v831_v41 = vsel %vm315_vm15, %v1410_v46, %v760_v29  ;;  %v829_v46 = vadd.f32 %v828_v10, %v1380_v26 }
 0x419   :  { %v667_v33 = vpop.xlane.xlu0 %666  ;;  %v789_v4 = vpop.permute.xlu1 %788  ;;  %v832_v21 = vsel %vm317_vm0, %v831_v41, %v1383_v30 }
 0x41a   :  { %v669_v19 = vrot.slane %v667_v33, 4  ;;  %v791_v11 = vmul.f32 %v789_v4, %v1380_v26 }
 0x41c   :  { %v671_v31 = vadd.f32 %v669_v19, %v662_v23 }
 0x41d   :  { %v796_v20 = vpop.xlane.xlu0 %795 }
 0x41e   :  { %v798_v32 = vrot.slane %v796_v20, 4  ;;  %v712_v22 = vsel %vm319_vm1, %v710_v37, %v671_v31 }
 0x420   :  { %v800_v43 = vadd.f32 %v798_v32, %v791_v11 }
 0x421   :  { %v688_v34 = vpop.xlane.xlu0 %687 }
 0x422   :  { %v690_v36 = vrot.slane %v688_v34, 4  ;;  %v833_v49 = vsel %vm319_vm1, %v832_v21, %v800_v43 }
 0x424   :  { %v692_v39 = vadd.f32 %v690_v36, %v675_v35 }
 0x425   :  { %v802_v2 = vpop.permute.xlu0 %801 }
 0x426   :  { %v714_v3 = vsel %vm321_vm2, %v712_v22, %v692_v39  ;;  %v804_v53 = vmul.f32 %v802_v2, %v1380_v26 }
 0x427   :  { %v716_v45 = vsel %vm323_vm4, %v714_v3, %v700_v40 }
 0x428   :  { %v718_v47 = vsel %vm325_vm5, %v716_v45, %v706_v44  ;;  %v821_v48 = vadd.f32 %v819_v15, %v804_v53 }
 0x429   :  { %v720_v50 = vsel %vm327_vm6, %v718_v47, 0.0 }
 0x42a   :  { %722 = vst.msk [vmem:[#allocation2] sm:$0xf] %vm66_vm3, %v720_v50  ;;  %v834_v51 = vsel %vm321_vm2, %v833_v49, %v821_v48 }
 0x42b   :  { %v835_v52 = vsel %vm323_vm4, %v834_v51, %v829_v46 }
 0x42c   :  { %v836_v55 = vsel %vm325_vm5, %v835_v52, %v830_v54 }
 0x42d   :  { %v837_v30 = vsel %vm327_vm6, %v836_v55, 0.0 }
 0x42e   :  { %838 = vst.msk [vmem:[#allocation3] sm:$0xf] %vm66_vm3, %v837_v30  ;;  %vm914_vm3 = vcmask 3072  }
 0x431   :  { %v843_v56 = vld [vmem:[#allocation2] sm:$0xf] }
 0x432   :  { %852 = vrot.lane.b32.xlu0 %v843_v56, %s1070_s6  ;;  %1038 = vlog2.f32 %v843_v56  ;;  %v857_v57 = vmax.f32 %v843_v56, 1e-30 }
 0x435   :  { %v879_v61 = vld [vmem:[#allocation3] sm:$0xf] }
 0x436   :  { %859 = vrot.lane.b32.xlu0 %v857_v57, %s1072_s10  ;;  %888 = vrot.lane.b32.xlu1 %v879_v61, %s1070_s6  ;;  %1040 = vlog2.f32 %v879_v61  ;;  %v893_v28 = vmax.f32 %v879_v61, 1e-30 }
 0x43c   :  { %v1039_v26 = vpop.eup %1038 }
 0x43d   :  { %v845_v63 = vmul.f32 0.6931472, %v1039_v26 }
 0x43f   :  { %847 = vrot.lane.b32.xlu0 %v845_v63, %s1072_s10 }
 0x440   :  { %v1041_v38 = vpop.eup %1040 }
 0x441   :  { %v881_v62 = vmul.f32 0.6931472, %v1041_v38 }
 0x443   :  { %883 = vrot.lane.b32.xlu0 %v881_v62, %s1072_s10 }
 0x4a4   :  { %v853_v0 = vpop.permute.xlu0 %852 }
 0x4a5   :  { %1042 = vrcp.f32 %v853_v0 }
 0x4a8   :  { %v860_v58 = vpop.permute.xlu0 %859  ;;  %v889_v17 = vpop.permute.xlu1 %888 }
 0x4a9   :  { %1044 = vrcp.f32 %v860_v58 }
 0x4af   :  { %v1043_v1 = vpop.eup %1042 }
 0x4b0   :  { %v856_v8 = vmul.f32 %v1043_v1, %v843_v56 }
 0x4b1   :  { %v848_v12 = vpop.permute.xlu0 %847 }
 0x4b2   :  { %v865_v6 = vmul.f32 %v864_v7, %v856_v8  ;;  %v850_v18 = vadd.f32 %v848_v12, %v843_v56 }
 0x4b3   :  { %v1045_v9 = vpop.eup %1044 }
 0x4b4   :  { %v863_v42 = vmul.f32 %v1045_v9, %v843_v56 }
 0x4b5   :  { %v884_v13 = vpop.permute.xlu0 %883 }
 0x4b6   :  { %v868_v10 = vmul.f32 %v867_v5, %v863_v42  ;;  %v886_v31 = vadd.f32 %v884_v13, %v879_v61 }
 0x4b8   :  { %870 = vrot.lane.b32.xlu0 %v868_v10, %s1072_s10 }
 0x4bc   :  { %895 = vrot.lane.b32.xlu0 %v893_v28, %s1072_s10 }
 0x52a   :  { %v871_v59 = vpop.permute.xlu0 %870 }
 0x52b   :  { %v873_v60 = vadd.f32 %v871_v59, %v865_v6 }
 0x52d   :  { %875 = vrot.lane.b32.xlu1 %v873_v60, %s1073_s20 }
 0x52e   :  { %v896_v14 = vpop.permute.xlu0 %895 }
 0x52f   :  { %1046 = vrcp.f32 %v896_v14 }
 0x530   :  { %1048 = vrcp.f32 %v889_v17 }
 0x539   :  { %v1047_v27 = vpop.eup %1046 }
 0x53a   :  { %v899_v33 = vmul.f32 %v1047_v27, %v879_v61  ;;  %v1049_v23 = vpop.eup %1048 }
 0x53b   :  { %v892_v24 = vmul.f32 %v1049_v23, %v879_v61 }
 0x53c   :  { %v901_v16 = vmul.f32 %v899_v33, %v867_v5 }
 0x53d   :  { %v900_v4 = vmul.f32 %v892_v24, %v864_v7 }
 0x53e   :  { %903 = vrot.lane.b32.xlu1 %v901_v16, %s1072_s10 }
 0x59f   :  { %v876_v19 = vpop.permute.xlu1 %875 }
 0x5a0   :  { %v878_v20 = vsub.f32 %v850_v18, %v876_v19 }
 0x5b0   :  { %v904_v25 = vpop.permute.xlu1 %903 }
 0x5b1   :  { %v906_v29 = vadd.f32 %v904_v25, %v900_v4 }
 0x5b3   :  { %908 = vrot.lane.b32.xlu0 %v906_v29, %s1073_s20 }
 0x625   :  { %v909_v32 = vpop.permute.xlu0 %908 }
 0x626   :  { %v911_v34 = vsub.f32 %v886_v31, %v909_v32 }
 0x628   :  { %v912_v35 = vadd.f32 %v911_v34, %v878_v20 }
 0x62a   :  { %v913_v36 = vmul.f32 0.5, %v912_v35 }
 0x62c   :  { %915 = vst.msk [vmem:[%s1517_s12] sm:$0xf] %vm914_vm3, %v913_v36 }
 0x62d   :  { %920 = vsyncpa [#allocation5], 1 }

</bundles_post_ra>
